<compile_context>
chip_gen: v7x
topology: tpu7x:2x2x1
jax: 0.10.0
libtpu: 0.0.40
codegen_flags: <defaults>
</compile_context>

<pallas_src>
import functools
import math

import numpy as np
import jax
import jax.numpy as jnp
from jax import lax
from jax.experimental import pallas as pl
from jax.experimental.pallas import tpu as pltpu

_VMEM_LIMIT = 32 * 1024 * 1024   # far below 64 MiB (v7x) / 128 MiB (v5e/v6e)
_ROW_TILE_CAP = 1024             # conservative for v7x; per-tile footprint is tiny


def _round_up(x, m):
    return (x + m - 1) // m * m


def _pick_tile(m, cap=_ROW_TILE_CAP):
    """Row tile: 32-aligned, capped, and chosen so the grid has >=2 steps
    whenever m allows it (lets dimension_semantics=("parallel",) actually
    shard tiles across v7x's two TensorCores)."""
    if m <= 32:
        return m                       # single block == full array dim
    return min(cap, _round_up(-(-m // 2), 32))


# ----------------------------- Pallas kernels ------------------------------

def _conv_pool_relu_kernel(p_ref, w_ref, b_ref, o_ref):
    """Fused conv3x3 + bias + 2x2 maxpool + ReLU for one row tile.

    p_ref: (Mt, 16*Cin) bf16 -- the 4x4 input window each pooled pixel reads.
    w_ref: (16*Cin, 4*Cout) bf16 -- 3x3 kernel zero-embedded at 4 pool offsets.
    b_ref: (1, Cout) f32.   o_ref: (Mt, Cout) bf16 pooled+ReLU'd activations.
    """
    cout = o_ref.shape[-1]
    # one long MXU dot instead of four short ones
    y = jnp.dot(p_ref[...], w_ref[...], preferred_element_type=jnp.float32)
    m = jnp.maximum(jnp.maximum(y[:, 0 * cout:1 * cout], y[:, 1 * cout:2 * cout]),
                    jnp.maximum(y[:, 2 * cout:3 * cout], y[:, 3 * cout:4 * cout]))
    # bias commutes with the max: max(y_i + b) == max(y_i) + b
    o_ref[...] = jnp.maximum(m + b_ref[...], 0.0).astype(o_ref.dtype)


def _conv3_mlp_kernel(p_ref, w3_ref, b3_ref, w1_ref, b1_ref, w2_ref, b2_ref,
                      o_ref):
    """conv3+pool+ReLU (1x1 spatial) fused with fc1 + ReLU + dropout(eval) + fc2."""
    nc = b3_ref.shape[-1]                                   # nb_conv3 (=128)
    y = jnp.dot(p_ref[...], w3_ref[...], preferred_element_type=jnp.float32)
    f = jnp.maximum(jnp.maximum(y[:, 0 * nc:1 * nc], y[:, 1 * nc:2 * nc]),
                    jnp.maximum(y[:, 2 * nc:3 * nc], y[:, 3 * nc:4 * nc]))
    f = jnp.maximum(f + b3_ref[...], 0.0)                   # (Bt, nc) features
    h = jnp.dot(f.astype(w1_ref.dtype), w1_ref[...],
                preferred_element_type=jnp.float32)
    h = jnp.maximum(h + b1_ref[...], 0.0)
    # TODO(synk): nn.Dropout(p=0.3) is identity in eval mode; the stochastic
    # training-mode mask is not implemented here.
    o = jnp.dot(h.astype(w2_ref.dtype), w2_ref[...],
                preferred_element_type=jnp.float32)
    o_ref[...] = (o + b2_ref[...]).astype(o_ref.dtype)


# ------------------------------- wrappers -----------------------------------

def conv_pool_relu(patches, wemb, b):
    """relu(maxpool2(conv3x3(x)+b)) from 4x4-window patches -> (M, Cout) bf16."""
    M, K = patches.shape
    N4 = wemb.shape[1]
    cout = N4 // 4
    Mt = _pick_tile(M)
    return pl.pallas_call(
        _conv_pool_relu_kernel,
        out_shape=jax.ShapeDtypeStruct((M, cout), jnp.bfloat16),
        grid=(pl.cdiv(M, Mt),),                 # ragged tail clipped by Pallas
        in_specs=[
            pl.BlockSpec((Mt, K), lambda i: (i, 0)),
            pl.BlockSpec((K, N4), lambda i: (0, 0)),
            pl.BlockSpec((1, cout), lambda i: (0, 0)),
        ],
        out_specs=pl.BlockSpec((Mt, cout), lambda i: (i, 0)),
        compiler_params=pltpu.CompilerParams(
            dimension_semantics=("parallel",),
            vmem_limit_bytes=_VMEM_LIMIT),
        cost_estimate=pl.CostEstimate(
            flops=2 * M * K * N4,
            transcendentals=0,
            bytes_accessed=2 * (M * K + K * N4 + M * cout) + 4 * cout),
    )(patches, wemb, b)


def conv3_mlp(patches, w3, b3, w1, b1, w2, b2):
    """conv3+pool+relu -> fc1 -> relu -> (dropout=id) -> fc2, one pallas_call."""
    B, K = patches.shape
    N4 = w3.shape[1]
    H = w1.shape[1]
    N = w2.shape[1]
    Bt = _pick_tile(B)
    return pl.pallas_call(
        _conv3_mlp_kernel,
        out_shape=jax.ShapeDtypeStruct((B, N), jnp.float32),
        grid=(pl.cdiv(B, Bt),),
        in_specs=[
            pl.BlockSpec((Bt, K), lambda i: (i, 0)),
            pl.BlockSpec(w3.shape, lambda i: (0, 0)),
            pl.BlockSpec(b3.shape, lambda i: (0, 0)),
            pl.BlockSpec(w1.shape, lambda i: (0, 0)),
            pl.BlockSpec(b1.shape, lambda i: (0, 0)),
            pl.BlockSpec(w2.shape, lambda i: (0, 0)),
            pl.BlockSpec(b2.shape, lambda i: (0, 0)),
        ],
        out_specs=pl.BlockSpec((Bt, N), lambda i: (i, 0)),
        compiler_params=pltpu.CompilerParams(
            dimension_semantics=("parallel",),
            vmem_limit_bytes=_VMEM_LIMIT),
        cost_estimate=pl.CostEstimate(
            flops=2 * B * (K * N4 + (N4 // 4) * H + H * N),
            transcendentals=0,
            bytes_accessed=2 * (B * K + K * N4 + (N4 // 4) * H + H * N)
                           + 4 * (B * N + N4 // 4 + H + N)),
    )(patches, w3, b3, w1, b1, w2, b2)


# ------------------------------- JAX glue -----------------------------------

def pool_patches(x):
    """x: (B, H, W, C) -> ((B*Hp*Wp, 16*C), (B, Hp, Wp)).

    Row r = (b, hp, wp) holds the 4x4xC input window read by that pooled output
    pixel's four conv candidates; tap order (u, v, ci) matches the embedded
    conv weight rows."""
    B, H, W, C = x.shape
    Hp, Wp = (H - 2) // 2, (W - 2) // 2
    taps = [x[:, u:u + 2 * Hp:2, v:v + 2 * Wp:2, :]
            for u in range(4) for v in range(4)]
    p = jnp.concatenate(taps, axis=-1)                    # (B, Hp, Wp, 16*C)
    return p.reshape(B * Hp * Wp, 16 * C), (B, Hp, Wp)


def _embed_conv_weight(w):
    """(Cout, Cin, 3, 3) PyTorch layout -> (16*Cin, 4*Cout) bf16.

    The 3x3 kernel is placed (zero-padded) at each of the 4 pool offsets
    (di, dj) inside the 4x4 patch: row = (u*4+v)*Cin + ci, col = (2di+dj)*Cout + co.
    """
    w = np.asarray(jax.device_get(w), np.float32)
    cout, cin = w.shape[:2]
    e = np.zeros((16, cin, 4, cout), np.float32)
    for di in range(2):
        for dj in range(2):
            cand = 2 * di + dj
            for kh in range(3):
                for kw in range(3):
                    u, v = di + kh, dj + kw
                    e[u * 4 + v, :, cand, :] = w[:, :, kh, kw].T
    return jnp.asarray(e.reshape(16 * cin, 4 * cout), dtype=jnp.bfloat16)


def init_params(key, nb_hidden=100, nb_conv3=128, nb_out=10):
    """Deterministic PyTorch-style uniform(-1/sqrt(fan_in), 1/sqrt(fan_in))."""
    def u(k, shape, fan_in):
        bound = 1.0 / math.sqrt(fan_in)
        return jax.random.uniform(k, shape, jnp.float32, -bound, bound)

    ks = jax.random.split(key, 10)
    p = {}
    p["w1"] = u(ks[0], (16, 1, 3, 3), 1 * 9)
    p["b1"] = u(ks[1], (16,), 1 * 9)
    p["w2"] = u(ks[2], (32, 16, 3, 3), 16 * 9)
    p["b2"] = u(ks[3], (32,), 16 * 9)
    p["w3"] = u(ks[4], (nb_conv3, 32, 3, 3), 32 * 9)
    p["b3"] = u(ks[5], (nb_conv3,), 32 * 9)
    p["fw1"] = u(ks[6], (nb_conv3, nb_hidden), nb_conv3)   # stored (in, out)
    p["fb1"] = u(ks[7], (nb_hidden,), nb_conv3)
    p["fw2"] = u(ks[8], (nb_hidden, nb_out), nb_hidden)    # stored (in, out)
    p["fb2"] = u(ks[9], (nb_out,), nb_hidden)
    return p


def prepare_params(params):
    """One-time re-layout: conv weights embedded to (16*Cin, 4*Cout) bf16;
    fc weights bf16 with hidden/output zero-padded to 128 lanes; biases f32."""
    convs = [(_embed_conv_weight(params[w]),
              params[b].astype(jnp.float32).reshape(1, -1))
             for w, b in (("w1", "b1"), ("w2", "b2"), ("w3", "b3"))]
    nb_conv3, nb_hidden = params["fw1"].shape
    nb_out = params["fw2"].shape[1]
    hid_p = _round_up(nb_hidden, 128)
    out_p = _round_up(nb_out, 128)
    fw1 = jnp.pad(params["fw1"], ((0, 0), (0, hid_p - nb_hidden))).astype(jnp.bfloat16)
    fb1 = jnp.pad(params["fb1"], (0, hid_p - nb_hidden)).reshape(1, hid_p).astype(jnp.float32)
    fw2 = jnp.pad(params["fw2"], ((0, hid_p - nb_hidden), (0, out_p - nb_out))).astype(jnp.bfloat16)
    fb2 = jnp.pad(params["fb2"], (0, out_p - nb_out)).reshape(1, out_p).astype(jnp.float32)
    return {"convs": convs, "fw1": fw1, "fb1": fb1, "fw2": fw2, "fb2": fb2}


@functools.partial(jax.jit, static_argnames=("nb_out",))
def conv_net_forward(prepared, x_nchw, nb_out=10):
    x = jnp.transpose(x_nchw, (0, 2, 3, 1)).astype(jnp.bfloat16)   # NCHW->NHWC bf16
    for wemb, b in prepared["convs"][:2]:                # conv1, conv2 stages
        patches, (B, Hp, Wp) = pool_patches(x)
        y = conv_pool_relu(patches, wemb, b)             # (B*Hp*Wp, Cout) bf16
        x = y.reshape(B, Hp, Wp, wemb.shape[1] // 4)
    # spatial is 1x1 after stage 3, so NHWC flatten == PyTorch x.view(B, -1)
    patches3, _ = pool_patches(x)                        # (B, 16*32)
    w3, b3 = prepared["convs"][2]
    logits = conv3_mlp(patches3, w3, b3, prepared["fw1"], prepared["fb1"],
                       prepared["fw2"], prepared["fb2"])
    return logits[:, :nb_out]


def reference_forward(params, x_nchw):
    """Pure-JAX f32 reference of the PyTorch module (eval mode)."""
    x = x_nchw.astype(jnp.float32)
    for wk, bk in (("w1", "b1"), ("w2", "b2"), ("w3", "b3")):
        x = lax.conv_general_dilated(x, params[wk], (1, 1), "VALID",
                                     dimension_numbers=("NCHW", "OIHW", "NCHW"))
        x = x + params[bk].reshape(1, -1, 1, 1)
        x = lax.reduce_window(x, -jnp.inf, lax.max,
                              (1, 1, 2, 2), (1, 1, 2, 2), "VALID")
        x = jnp.maximum(x, 0.0)
    feats = x.reshape(x.shape[0], -1)
    h = jnp.maximum(feats @ params["fw1"] + params["fb1"], 0.0)
    return h @ params["fw2"] + params["fb2"]


if __name__ == "__main__":
    x = jax.random.normal(jax.random.PRNGKey(0), (2, 1, 28, 28),
                          dtype=jnp.float32)              # NCHW, as in PyTorch
    params = init_params(jax.random.PRNGKey(42))
    prepared = prepare_params(params)

    out = jax.block_until_ready(conv_net_forward(prepared, x))
    assert out.shape == (2, 10), out.shape

    ref = jax.block_until_ready(reference_forward(params, x))
    np.testing.assert_allclose(np.asarray(out), np.asarray(ref),
                               rtol=5e-2, atol=5e-2)      # bf16 matmul tolerance
    print("KERNEL_OK")
</pallas_src>

<mosaic_0001>
module attributes {stable_mosaic.version = 11 : i64} {
  func.func @_conv_pool_relu_kernel(%arg0: i32, %arg1: memref<192x16xbf16, #tpu.memory_space<vmem>>, %arg2: memref<16x64xbf16, #tpu.memory_space<vmem>>, %arg3: memref<1x16xf32, #tpu.memory_space<vmem>>, %arg4: memref<192x16xbf16, #tpu.memory_space<vmem>>) attributes {dimension_semantics = [#tpu.dimension_semantics<parallel>], iteration_bounds = array<i64: 2>, scalar_prefetch = 0 : i64, scratch_operands = 0 : i64, tpu.core_type = #tpu.core_type<tc>, window_params = [{transform_indices = @transform_0, window_bounds = array<i64: 192, 16>}, {pipeline_mode = #tpu.pipeline_mode<synchronous>, transform_indices = @transform_1, window_bounds = array<i64: 16, 64>}, {pipeline_mode = #tpu.pipeline_mode<synchronous>, transform_indices = @transform_2, window_bounds = array<i64: 1, 16>}, {transform_indices = @transform_3, window_bounds = array<i64: 192, 16>}]} {
    %c0 = arith.constant 0 : index
    %c0_0 = arith.constant 0 : index
    %0 = vector.load %arg1[%c0, %c0_0] : memref<192x16xbf16, #tpu.memory_space<vmem>>, vector<192x16xbf16>
    %c0_1 = arith.constant 0 : index
    %c0_2 = arith.constant 0 : index
    %1 = vector.load %arg2[%c0_1, %c0_2] : memref<16x64xbf16, #tpu.memory_space<vmem>>, vector<16x64xbf16>
    %cst = arith.constant dense<0.000000e+00> : vector<192x64xf32>
    %2 = tpu.matmul %0, %1, %cst {dimension_numbers = #tpu.dot_dimension_numbers<[1], [0], [0], [1], [0, 0, 1, 1], [], []>} : vector<192x16xbf16>, vector<16x64xbf16>, vector<192x64xf32> -> vector<192x64xf32>
    %3 = vector.extract_strided_slice %2 {offsets = [0, 0], sizes = [192, 16], strides = [1, 1]} : vector<192x64xf32> to vector<192x16xf32>
    %4 = vector.extract_strided_slice %2 {offsets = [0, 16], sizes = [192, 16], strides = [1, 1]} : vector<192x64xf32> to vector<192x16xf32>
    %5 = arith.maximumf %3, %4 : vector<192x16xf32>
    %6 = vector.extract_strided_slice %2 {offsets = [0, 32], sizes = [192, 16], strides = [1, 1]} : vector<192x64xf32> to vector<192x16xf32>
    %7 = vector.extract_strided_slice %2 {offsets = [0, 48], sizes = [192, 16], strides = [1, 1]} : vector<192x64xf32> to vector<192x16xf32>
    %8 = arith.maximumf %6, %7 : vector<192x16xf32>
    %9 = arith.maximumf %5, %8 : vector<192x16xf32>
    %c0_3 = arith.constant 0 : index
    %c0_4 = arith.constant 0 : index
    %10 = vector.load %arg3[%c0_3, %c0_4] : memref<1x16xf32, #tpu.memory_space<vmem>>, vector<1x16xf32>
    %11 = vector.broadcast %10 : vector<1x16xf32> to vector<192x16xf32>
    %12 = arith.addf %9, %11 : vector<192x16xf32>
    %cst_5 = arith.constant 0.000000e+00 : f32
    %13 = vector.broadcast %cst_5 : f32 to vector<192x16xf32>
    %14 = arith.maximumf %12, %13 : vector<192x16xf32>
    %15 = arith.truncf %14 : vector<192x16xf32> to vector<192x16xbf16>
    %c0_6 = arith.constant 0 : index
    %c0_7 = arith.constant 0 : index
    %16 = vector.load %arg4[%c0_6, %c0_7] : memref<192x16xbf16, #tpu.memory_space<vmem>>, vector<192x16xbf16>
    tpu.vector_store %arg4[%c0_6, %c0_7], %15 {strides = array<i32>} : memref<192x16xbf16, #tpu.memory_space<vmem>>, vector<192x16xbf16>,
    return
  }
  func.func @transform_0(%arg0: i32) -> (i32, i32) {
    %c0_i32 = arith.constant 0 : i32
    %c0_i32_0 = arith.constant 0 : i32
    return %arg0, %c0_i32 : i32, i32
  }
  func.func @transform_1(%arg0: i32) -> (i32, i32) {
    %c0_i32 = arith.constant 0 : i32
    %c0_i32_0 = arith.constant 0 : i32
    %c0_i32_1 = arith.constant 0 : i32
    return %c0_i32, %c0_i32_0 : i32, i32
  }
  func.func @transform_2(%arg0: i32) -> (i32, i32) {
    %c0_i32 = arith.constant 0 : i32
    %c0_i32_0 = arith.constant 0 : i32
    %c0_i32_1 = arith.constant 0 : i32
    return %c0_i32, %c0_i32_0 : i32, i32
  }
  func.func @transform_3(%arg0: i32) -> (i32, i32) {
    %c0_i32 = arith.constant 0 : i32
    %c0_i32_0 = arith.constant 0 : i32
    return %arg0, %c0_i32 : i32, i32
  }
}

module attributes {stable_mosaic.version = 11 : i64} {
  func.func @_conv_pool_relu_kernel(%arg0: i32, %arg1: memref<32x256xbf16, #tpu.memory_space<vmem>>, %arg2: memref<256x128xbf16, #tpu.memory_space<vmem>>, %arg3: memref<1x32xf32, #tpu.memory_space<vmem>>, %arg4: memref<32x32xbf16, #tpu.memory_space<vmem>>) attributes {dimension_semantics = [#tpu.dimension_semantics<parallel>], iteration_bounds = array<i64: 2>, scalar_prefetch = 0 : i64, scratch_operands = 0 : i64, tpu.core_type = #tpu.core_type<tc>, window_params = [{transform_indices = @transform_0, window_bounds = array<i64: 32, 256>}, {pipeline_mode = #tpu.pipeline_mode<synchronous>, transform_indices = @transform_1, window_bounds = array<i64: 256, 128>}, {pipeline_mode = #tpu.pipeline_mode<synchronous>, transform_indices = @transform_2, window_bounds = array<i64: 1, 32>}, {transform_indices = @transform_3, window_bounds = array<i64: 32, 32>}]} {
    %c0 = arith.constant 0 : index
    %c0_0 = arith.constant 0 : index
    %0 = vector.load %arg1[%c0, %c0_0] : memref<32x256xbf16, #tpu.memory_space<vmem>>, vector<32x256xbf16>
    %c0_1 = arith.constant 0 : index
    %c0_2 = arith.constant 0 : index
    %1 = vector.load %arg2[%c0_1, %c0_2] : memref<256x128xbf16, #tpu.memory_space<vmem>>, vector<256x128xbf16>
    %cst = arith.constant dense<0.000000e+00> : vector<32x128xf32>
    %2 = tpu.matmul %0, %1, %cst {dimension_numbers = #tpu.dot_dimension_numbers<[1], [0], [0], [1], [0, 0, 1, 1], [], []>} : vector<32x256xbf16>, vector<256x128xbf16>, vector<32x128xf32> -> vector<32x128xf32>
    %3 = vector.extract_strided_slice %2 {offsets = [0, 0], sizes = [32, 32], strides = [1, 1]} : vector<32x128xf32> to vector<32x32xf32>
    %4 = vector.extract_strided_slice %2 {offsets = [0, 32], sizes = [32, 32], strides = [1, 1]} : vector<32x128xf32> to vector<32x32xf32>
    %5 = arith.maximumf %3, %4 : vector<32x32xf32>
    %6 = vector.extract_strided_slice %2 {offsets = [0, 64], sizes = [32, 32], strides = [1, 1]} : vector<32x128xf32> to vector<32x32xf32>
    %7 = vector.extract_strided_slice %2 {offsets = [0, 96], sizes = [32, 32], strides = [1, 1]} : vector<32x128xf32> to vector<32x32xf32>
    %8 = arith.maximumf %6, %7 : vector<32x32xf32>
    %9 = arith.maximumf %5, %8 : vector<32x32xf32>
    %c0_3 = arith.constant 0 : index
    %c0_4 = arith.constant 0 : index
    %10 = vector.load %arg3[%c0_3, %c0_4] : memref<1x32xf32, #tpu.memory_space<vmem>>, vector<1x32xf32>
    %11 = vector.broadcast %10 : vector<1x32xf32> to vector<32x32xf32>
    %12 = arith.addf %9, %11 : vector<32x32xf32>
    %cst_5 = arith.constant 0.000000e+00 : f32
    %13 = vector.broadcast %cst_5 : f32 to vector<32x32xf32>
    %14 = arith.maximumf %12, %13 : vector<32x32xf32>
    %15 = arith.truncf %14 : vector<32x32xf32> to vector<32x32xbf16>
    %c0_6 = arith.constant 0 : index
    %c0_7 = arith.constant 0 : index
    %16 = vector.load %arg4[%c0_6, %c0_7] : memref<32x32xbf16, #tpu.memory_space<vmem>>, vector<32x32xbf16>
    tpu.vector_store %arg4[%c0_6, %c0_7], %15 {strides = array<i32>} : memref<32x32xbf16, #tpu.memory_space<vmem>>, vector<32x32xbf16>,
    return
  }
  func.func @transform_0(%arg0: i32) -> (i32, i32) {
    %c0_i32 = arith.constant 0 : i32
    %c0_i32_0 = arith.constant 0 : i32
    return %arg0, %c0_i32 : i32, i32
  }
  func.func @transform_1(%arg0: i32) -> (i32, i32) {
    %c0_i32 = arith.constant 0 : i32
    %c0_i32_0 = arith.constant 0 : i32
    %c0_i32_1 = arith.constant 0 : i32
    return %c0_i32, %c0_i32_0 : i32, i32
  }
  func.func @transform_2(%arg0: i32) -> (i32, i32) {
    %c0_i32 = arith.constant 0 : i32
    %c0_i32_0 = arith.constant 0 : i32
    %c0_i32_1 = arith.constant 0 : i32
    return %c0_i32, %c0_i32_0 : i32, i32
  }
  func.func @transform_3(%arg0: i32) -> (i32, i32) {
    %c0_i32 = arith.constant 0 : i32
    %c0_i32_0 = arith.constant 0 : i32
    return %arg0, %c0_i32 : i32, i32
  }
}

module attributes {stable_mosaic.version = 11 : i64} {
  func.func @_conv3_mlp_kernel(%arg0: i32, %arg1: memref<2x512xbf16, #tpu.memory_space<vmem>>, %arg2: memref<512x512xbf16, #tpu.memory_space<vmem>>, %arg3: memref<1x128xf32, #tpu.memory_space<vmem>>, %arg4: memref<128x128xbf16, #tpu.memory_space<vmem>>, %arg5: memref<1x128xf32, #tpu.memory_space<vmem>>, %arg6: memref<128x128xbf16, #tpu.memory_space<vmem>>, %arg7: memref<1x128xf32, #tpu.memory_space<vmem>>, %arg8: memref<2x128xf32, #tpu.memory_space<vmem>>) attributes {dimension_semantics = [#tpu.dimension_semantics<parallel>], iteration_bounds = array<i64: 1>, scalar_prefetch = 0 : i64, scratch_operands = 0 : i64, tpu.core_type = #tpu.core_type<tc>, window_params = [{transform_indices = @transform_0, window_bounds = array<i64: 2, 512>}, {pipeline_mode = #tpu.pipeline_mode<synchronous>, transform_indices = @transform_1, window_bounds = array<i64: 512, 512>}, {pipeline_mode = #tpu.pipeline_mode<synchronous>, transform_indices = @transform_2, window_bounds = array<i64: 1, 128>}, {pipeline_mode = #tpu.pipeline_mode<synchronous>, transform_indices = @transform_3, window_bounds = array<i64: 128, 128>}, {pipeline_mode = #tpu.pipeline_mode<synchronous>, transform_indices = @transform_4, window_bounds = array<i64: 1, 128>}, {pipeline_mode = #tpu.pipeline_mode<synchronous>, transform_indices = @transform_5, window_bounds = array<i64: 128, 128>}, {pipeline_mode = #tpu.pipeline_mode<synchronous>, transform_indices = @transform_6, window_bounds = array<i64: 1, 128>}, {transform_indices = @transform_7, window_bounds = array<i64: 2, 128>}]} {
    %c0 = arith.constant 0 : index
    %c0_0 = arith.constant 0 : index
    %0 = vector.load %arg1[%c0, %c0_0] : memref<2x512xbf16, #tpu.memory_space<vmem>>, vector<2x512xbf16>
    %c0_1 = arith.constant 0 : index
    %c0_2 = arith.constant 0 : index
    %1 = vector.load %arg2[%c0_1, %c0_2] : memref<512x512xbf16, #tpu.memory_space<vmem>>, vector<512x512xbf16>
    %cst = arith.constant dense<0.000000e+00> : vector<2x512xf32>
    %2 = tpu.matmul %0, %1, %cst {dimension_numbers = #tpu.dot_dimension_numbers<[1], [0], [0], [1], [0, 0, 1, 1], [], []>} : vector<2x512xbf16>, vector<512x512xbf16>, vector<2x512xf32> -> vector<2x512xf32>
    %3 = vector.extract_strided_slice %2 {offsets = [0, 0], sizes = [2, 128], strides = [1, 1]} : vector<2x512xf32> to vector<2x128xf32>
    %4 = vector.extract_strided_slice %2 {offsets = [0, 128], sizes = [2, 128], strides = [1, 1]} : vector<2x512xf32> to vector<2x128xf32>
    %5 = arith.maximumf %3, %4 : vector<2x128xf32>
    %6 = vector.extract_strided_slice %2 {offsets = [0, 256], sizes = [2, 128], strides = [1, 1]} : vector<2x512xf32> to vector<2x128xf32>
    %7 = vector.extract_strided_slice %2 {offsets = [0, 384], sizes = [2, 128], strides = [1, 1]} : vector<2x512xf32> to vector<2x128xf32>
    %8 = arith.maximumf %6, %7 : vector<2x128xf32>
    %9 = arith.maximumf %5, %8 : vector<2x128xf32>
    %c0_3 = arith.constant 0 : index
    %c0_4 = arith.constant 0 : index
    %10 = vector.load %arg3[%c0_3, %c0_4] : memref<1x128xf32, #tpu.memory_space<vmem>>, vector<1x128xf32>
    %11 = vector.broadcast %10 : vector<1x128xf32> to vector<2x128xf32>
    %12 = arith.addf %9, %11 : vector<2x128xf32>
    %cst_5 = arith.constant 0.000000e+00 : f32
    %13 = vector.broadcast %cst_5 : f32 to vector<2x128xf32>
    %14 = arith.maximumf %12, %13 : vector<2x128xf32>
    %15 = arith.truncf %14 : vector<2x128xf32> to vector<2x128xbf16>
    %c0_6 = arith.constant 0 : index
    %c0_7 = arith.constant 0 : index
    %16 = vector.load %arg4[%c0_6, %c0_7] : memref<128x128xbf16, #tpu.memory_space<vmem>>, vector<128x128xbf16>
    %cst_8 = arith.constant dense<0.000000e+00> : vector<2x128xf32>
    %17 = tpu.matmul %15, %16, %cst_8 {dimension_numbers = #tpu.dot_dimension_numbers<[1], [0], [0], [1], [0, 0, 1, 1], [], []>} : vector<2x128xbf16>, vector<128x128xbf16>, vector<2x128xf32> -> vector<2x128xf32>
    %c0_9 = arith.constant 0 : index
    %c0_10 = arith.constant 0 : index
    %18 = vector.load %arg5[%c0_9, %c0_10] : memref<1x128xf32, #tpu.memory_space<vmem>>, vector<1x128xf32>
    %19 = vector.broadcast %18 : vector<1x128xf32> to vector<2x128xf32>
    %20 = arith.addf %17, %19 : vector<2x128xf32>
    %cst_11 = arith.constant 0.000000e+00 : f32
    %21 = vector.broadcast %cst_11 : f32 to vector<2x128xf32>
    %22 = arith.maximumf %20, %21 : vector<2x128xf32>
    %23 = arith.truncf %22 : vector<2x128xf32> to vector<2x128xbf16>
    %c0_12 = arith.constant 0 : index
    %c0_13 = arith.constant 0 : index
    %24 = vector.load %arg6[%c0_12, %c0_13] : memref<128x128xbf16, #tpu.memory_space<vmem>>, vector<128x128xbf16>
    %cst_14 = arith.constant dense<0.000000e+00> : vector<2x128xf32>
    %25 = tpu.matmul %23, %24, %cst_14 {dimension_numbers = #tpu.dot_dimension_numbers<[1], [0], [0], [1], [0, 0, 1, 1], [], []>} : vector<2x128xbf16>, vector<128x128xbf16>, vector<2x128xf32> -> vector<2x128xf32>
    %c0_15 = arith.constant 0 : index
    %c0_16 = arith.constant 0 : index
    %26 = vector.load %arg7[%c0_15, %c0_16] : memref<1x128xf32, #tpu.memory_space<vmem>>, vector<1x128xf32>
    %27 = vector.broadcast %26 : vector<1x128xf32> to vector<2x128xf32>
    %28 = arith.addf %25, %27 : vector<2x128xf32>
    %c0_17 = arith.constant 0 : index
    %c0_18 = arith.constant 0 : index
    %29 = vector.load %arg8[%c0_17, %c0_18] : memref<2x128xf32, #tpu.memory_space<vmem>>, vector<2x128xf32>
    tpu.vector_store %arg8[%c0_17, %c0_18], %28 {strides = array<i32>} : memref<2x128xf32, #tpu.memory_space<vmem>>, vector<2x128xf32>,
    return
  }
  func.func @transform_0(%arg0: i32) -> (i32, i32) {
    %c0_i32 = arith.constant 0 : i32
    %c0_i32_0 = arith.constant 0 : i32
    return %arg0, %c0_i32 : i32, i32
  }
  func.func @transform_1(%arg0: i32) -> (i32, i32) {
    %c0_i32 = arith.constant 0 : i32
    %c0_i32_0 = arith.constant 0 : i32
    %c0_i32_1 = arith.constant 0 : i32
    return %c0_i32, %c0_i32_0 : i32, i32
  }
  func.func @transform_2(%arg0: i32) -> (i32, i32) {
    %c0_i32 = arith.constant 0 : i32
    %c0_i32_0 = arith.constant 0 : i32
    %c0_i32_1 = arith.constant 0 : i32
    return %c0_i32, %c0_i32_0 : i32, i32
  }
  func.func @transform_3(%arg0: i32) -> (i32, i32) {
    %c0_i32 = arith.constant 0 : i32
    %c0_i32_0 = arith.constant 0 : i32
    %c0_i32_1 = arith.constant 0 : i32
    return %c0_i32, %c0_i32_0 : i32, i32
  }
  func.func @transform_4(%arg0: i32) -> (i32, i32) {
    %c0_i32 = arith.constant 0 : i32
    %c0_i32_0 = arith.constant 0 : i32
    %c0_i32_1 = arith.constant 0 : i32
    return %c0_i32, %c0_i32_0 : i32, i32
  }
  func.func @transform_5(%arg0: i32) -> (i32, i32) {
    %c0_i32 = arith.constant 0 : i32
    %c0_i32_0 = arith.constant 0 : i32
    %c0_i32_1 = arith.constant 0 : i32
    return %c0_i32, %c0_i32_0 : i32, i32
  }
  func.func @transform_6(%arg0: i32) -> (i32, i32) {
    %c0_i32 = arith.constant 0 : i32
    %c0_i32_0 = arith.constant 0 : i32
    %c0_i32_1 = arith.constant 0 : i32
    return %c0_i32, %c0_i32_0 : i32, i32
  }
  func.func @transform_7(%arg0: i32) -> (i32, i32) {
    %c0_i32 = arith.constant 0 : i32
    %c0_i32_0 = arith.constant 0 : i32
    return %arg0, %c0_i32 : i32, i32
  }
}

</mosaic_0001>

<bundles_post_ra>
// kernel: conv_net_forward.3
= control target key start
LH: loop header
LB: loop body
LE: loop exit
PB: predicated region body
PF: predicated region fallthrough
CT: control target
= control target key end

     0   :  { %s1527_s12 = smov 0   ;;  %s1529_s13 = smov 0   ;;  %s1977_s0 = inlined_call_operand.vmem [shape: bf16[338,16], index: 0, kind: input, shape index: {}]   ;;  %s1978_s1 = inlined_call_operand.vmem [shape: bf16[16,64], index: 1, kind: input, shape index: {}]   ;;  %s1979_s2 = inlined_call_operand.vmem [shape: f32[1,16], index: 2, kind: input, shape index: {}]   ;;  %s1980_s3 = inlined_call_operand.vmem [shape: bf16[338,16], index: 3, kind: output, shape index: {}]  }
   0x1   :  { %s1531_s14 = smov 0  }
   0x2 LB: > { %s1540_s15 = sadd.s32 4294967295, %s1471_s14   ;;  %s1542_s16 = sadd.s32 1, %s1471_s14   ;;  %s1471_s14 = sphi %s1531_s14, %s1987_s14   ;;  %s1467_s13 = sphi %s1529_s13, %s1986_s13   ;;  %s1463_s12 = sphi %s1527_s12, %s1985_s12  }
   0x3   : > { %s85_s17 = ssub.s32 %s1471_s14, %s1542_s16  ;;  %s88_s18 = sadd.s32 1, %s1467_s13 }
   0x4   : > { %p86_p0 = scmp.eq.s32.totalorder %s85_s17, 0  ;;  %p98_p1 = scmp.ne.s32.totalorder %s1467_s13, %s1463_s12 }
   0x5   : > { %p99_p2 = scmp.eq.s32.totalorder %s1540_s15, 1  ;;  %p1178_p3 = scmp.ge.s32.totalorder %s1471_s14, 1 }
   0x6   : > { %s1550_s19 = scalar_select %p86_p0, %s1467_s13, %s88_s18  }
   0x7   : > { %p1552_p4 = por %p99_p2, %p98_p1  ;;  %p146_p5 = scmp.lt.s32.totalorder %s1471_s14, 3 }
   0x9   : > { %p147_p6 = pnand %p1178_p3, %p146_p5 }
   0xa   : > { %v1400_v0 = vld [vmem:[%s1978_s1] sm:$0xff] (!%p147_p6)   ;;  %s1560_s23 = smul.u32 (!%p147_p6), 24, %s1540_s15  ;;  %vm285_vm0 = vcmask (!%p147_p6), 130048   ;;  %s1505_s29 = smov (!%p147_p6), 112   ;;  %vm842_vm1 = vcmask (!%p147_p6), 125952  }
   0xb   : > { %150 = sbr.rel (%p147_p6) target bundleno = 602 (0x25a), region = 32  ;;  %1280 = vmatprep.subr.bf16.mxu0 (!%p147_p6), %v1400_v0  ;;  %1306 = vmatprep.subr.bf16.mxu1 (!%p147_p6), %v1400_v0  ;;  %s1506_s30 = smov (!%p147_p6), 96  }
   0xc   : > { %p178_p7 = scmp.lt.s32.totalorder (!%p147_p6), %s1560_s23, 42  ;;  %1281 = vmatpush3.bf16.msra.mxu0 (!%p147_p6), %v1400_v0  ;;  %1307 = vmatpush3.bf16.msra.mxu1 (!%p147_p6), %v1400_v0  ;;  %s170_s4 = sand.u32 (!%p147_p6), 1, %s1463_s12  }
   0xd   : > { %s1308_s7 = smul.u32 (!%p147_p6), 96, %s170_s4 }
   0xf   : > { %s1771_s8 = scalar_lea.vmem (!%p147_p6), [#allocation2], %s1308_s7  }
  0x12   : > { %s179_s24 = scalar_select %p178_p7, %s1560_s23, 42 }
  0x13   : > { %s875_s9 = ssub.s32 (%p1552_p4), 43, %s1560_s23  ;;  %s1266_s10 = smul.u32 (%p1552_p4), 96, %s1540_s15 }
  0x14   : > { %s1179_s25 = sshll.u32 %s179_s24, 2  ;;  %p876_p8 = scmp.lt.s32.totalorder (%p1552_p4), %s875_s9, 24 }
  0x15   : > { %s181_s28 = scalar_lea.vmem %s1977_s0, %s1179_s25  ;;  %s1870_s14 = scalar_lea.vmem (%p1552_p4), %s1980_s3, %s1266_s10  }
  0x16   : > { %v1401_v1 = vld [vmem:[%s181_s28] sm:$0xff]   ;;  %v1402_v2 = vld [vmem:[%s181_s28 + $0x30] sm:$0xff]   ;;  %v1403_v3 = vld [vmem:[%s181_s28 + $0x8] sm:$0xff]  }
  0x17   : > { %1282 = vmatprep.mubr.msk.bf16.mxu0 %vm285_vm0, %v1401_v1  ;;  %1294 = vmatprep.mubr.msk.bf16.mxu1 %vm285_vm0, %v1402_v2  ;;  %v1404_v4 = vld [vmem:[%s181_s28 + $0x38] sm:$0xff]   ;;  %v1405_v5 = vld [vmem:[%s181_s28 + $0x10] sm:$0xff]   ;;  %v1407_v6 = vld [vmem:[%s181_s28 + $0x40] sm:$0xff]  }
  0x18   : > { %1283 = vmatmul.mubr.msk.bf16.vlgmr.msra.gmra.mrb[0].mxu0 %vm285_vm0, %v1403_v3  ;;  %1295 = vmatmul.mubr.msk.bf16.vlgmr.msra.gmra.mrb[0].mxu1 %vm285_vm0, %v1404_v4  ;;  %v1406_v7 = vld [vmem:[%s181_s28 + $0x18] sm:$0xff]   ;;  %v1408_v8 = vld [vmem:[%s181_s28 + $0x48] sm:$0xff]   ;;  %v1409_v9 = vld [vmem:[%s181_s28 + $0x20] sm:$0xff]  }
  0x19   : > { %1286 = vmatprep.mubr.msk.bf16.mxu0 %vm285_vm0, %v1405_v5  ;;  %1298 = vmatprep.mubr.msk.bf16.mxu1 %vm285_vm0, %v1407_v6  ;;  %v1411_v10 = vld [vmem:[%s181_s28 + $0x50] sm:$0xff]   ;;  %v1410_v11 = vld [vmem:[%s181_s28 + $0x28] sm:$0xff]   ;;  %v1412_v12 = vld [vmem:[%s181_s28 + $0x58] sm:$0xff]  }
  0x20   : > { %1287 = vmatmul.mubr.msk.bf16.gmra.mrb[4].mxu0 %vm285_vm0, %v1406_v7  ;;  %1299 = vmatmul.mubr.msk.bf16.gmra.mrb[4].mxu1 %vm285_vm0, %v1408_v8 }
  0x21   : > { %1290 = vmatprep.mubr.msk.bf16.mxu0 %vm285_vm0, %v1409_v9  ;;  %1302 = vmatprep.mubr.msk.bf16.mxu1 %vm285_vm0, %v1411_v10 }
  0x28   : > { %1291 = vmatmul.mubr.msk.bf16.gmra.mrb[8].mxu0 %vm285_vm0, %v1410_v11  ;;  %1303 = vmatmul.mubr.msk.bf16.gmra.mrb[8].mxu1 %vm285_vm0, %v1412_v12 }
  0xeb   : > { %v1284_v13 = vpop.f32.mrb[0].mxu0  ;;  %v1296_v14 = vpop.f32.mrb[0].mxu1 }
  0xec   : > { %479 = vrot.lane.b32.xlu1 %v1284_v13, %s1505_s29  ;;  %v356_v15 = vpop.f32.mrb[1].mxu0  ;;  %503 = vrot.lane.b32.xlu0 %v1296_v14, %s1505_s29  ;;  %v404_v16 = vpop.f32.mrb[1].mxu1 }
  0xed   : > { %v1285_v17 = vpop.f32.mrb[2].mxu0  ;;  %v1297_v18 = vpop.f32.mrb[2].mxu1 }
  0xee   : > { %v359_v19 = vpop.f32.mrb[3].mxu0  ;;  %v1581_v20 = vpop.f32.mrb[3].mxu1 }
  0xf0   : > { %481 = vrot.lane.b32.xlu1 %v1285_v17, %s1505_s29  ;;  %475 = vrot.lane.b32.xlu0 %v356_v15, %s1505_s29 }
  0xf3   : > { %v1288_v21 = vpop.f32.mrb[4].mxu0  ;;  %v1588_v23 = vpop.f32.mrb[4].mxu1 }
  0xf4   : > { %505 = vrot.lane.b32.xlu1 %v1297_v18, %s1505_s29  ;;  %v1586_v22 = vpop.f32.mrb[5].mxu0  ;;  %499 = vrot.lane.b32.xlu0 %v404_v16, %s1505_s29  ;;  %v1591_v25 = vpop.f32.mrb[5].mxu1 }
  0xf5   : > { %v1289_v24 = vpop.f32.mrb[6].mxu0  ;;  %v1595_v27 = vpop.f32.mrb[6].mxu1 }
  0xf6   : > { %v1593_v26 = vpop.f32.mrb[7].mxu0  ;;  %v1597_v28 = vpop.f32.mrb[7].mxu1 }
  0xf8   : > { %501 = vrot.lane.b32.xlu1 %v1581_v20, %s1505_s29  ;;  %477 = vrot.lane.b32.xlu0 %v359_v19, %s1505_s29 }
  0xfb   : > { %v1602_v29 = vpop.f32.mrb[8].mxu0  ;;  %v1607_v31 = vpop.f32.mrb[8].mxu1 }
  0xfc   : > { %489 = vrot.lane.b32.xlu1 %v1289_v24, %s1505_s29  ;;  %v1605_v30 = vpop.f32.mrb[9].mxu0  ;;  %487 = vrot.lane.b32.xlu0 %v1288_v21, %s1505_s29  ;;  %v1612_v33 = vpop.f32.mrb[9].mxu1 }
  0xfd   : > { %v1610_v32 = vpop.f32.mrb[10].mxu0  ;;  %v1616_v35 = vpop.f32.mrb[10].mxu1 }
  0xfe   : > { %v1614_v34 = vpop.f32.mrb[11].mxu0  ;;  %v1618_v36 = vpop.f32.mrb[11].mxu1 }
 0x100   : > { %513 = vrot.lane.b32.xlu1 %v1595_v27, %s1505_s29  ;;  %511 = vrot.lane.b32.xlu0 %v1588_v23, %s1505_s29 }
 0x104   : > { %485 = vrot.lane.b32.xlu1 %v1593_v26, %s1505_s29  ;;  %483 = vrot.lane.b32.xlu0 %v1586_v22, %s1505_s29 }
 0x108   : > { %509 = vrot.lane.b32.xlu1 %v1597_v28, %s1505_s29  ;;  %507 = vrot.lane.b32.xlu0 %v1591_v25, %s1505_s29 }
 0x10c   : > { %497 = vrot.lane.b32.xlu1 %v1610_v32, %s1505_s29  ;;  %495 = vrot.lane.b32.xlu0 %v1602_v29, %s1505_s29 }
 0x110   : > { %493 = vrot.lane.b32.xlu1 %v1614_v34, %s1505_s29  ;;  %491 = vrot.lane.b32.xlu0 %v1605_v30, %s1505_s29 }
 0x114   : > { %517 = vrot.lane.b32.xlu1 %v1618_v36, %s1505_s29  ;;  %515 = vrot.lane.b32.xlu0 %v1612_v33, %s1505_s29 }
 0x118   : > { %521 = vrot.lane.b32.xlu1 %v1616_v35, %s1505_s29  ;;  %519 = vrot.lane.b32.xlu0 %v1607_v31, %s1505_s29 }
 0x15e   : > { %v480_v37 = vpop.permute.xlu1 %479  ;;  %v504_v38 = vpop.permute.xlu0 %503 }
 0x15f   : > { %v1648_v39 = vmax.f32 %v1284_v13, %v480_v37  ;;  %v1652_v41 = vmax.f32 %v1296_v14, %v504_v38 }
 0x161   : > { %599 = vrot.lane.b32.xlu0 %v1648_v39, %s1506_s30 }
 0x162   : > { %v482_v40 = vpop.permute.xlu1 %481  ;;  %v476_v42 = vpop.permute.xlu0 %475 }
 0x163   : > { %v1654_v43 = vmax.f32 %v1285_v17, %v482_v40  ;;  %v1660_v45 = vmax.f32 %v356_v15, %v476_v42 }
 0x165   : > { %623 = vrot.lane.b32.xlu0 %v1652_v41, %s1506_s30  ;;  %601 = vrot.lane.b32.xlu1 %v1654_v43, %s1506_s30 }
 0x166   : > { %v506_v44 = vpop.permute.xlu1 %505  ;;  %v500_v46 = vpop.permute.xlu0 %499 }
 0x167   : > { %v1662_v47 = vmax.f32 %v1297_v18, %v506_v44  ;;  %v1668_v49 = vmax.f32 %v404_v16, %v500_v46 }
 0x169   : > { %595 = vrot.lane.b32.xlu0 %v1660_v45, %s1506_s30  ;;  %625 = vrot.lane.b32.xlu1 %v1662_v47, %s1506_s30 }
 0x16a   : > { %v502_v48 = vpop.permute.xlu1 %501  ;;  %v478_v50 = vpop.permute.xlu0 %477 }
 0x16b   : > { %v1670_v51 = vmax.f32 %v359_v19, %v478_v50  ;;  %v1677_v54 = vmax.f32 %v1581_v20, %v502_v48 }
 0x16d   : > { %619 = vrot.lane.b32.xlu0 %v1668_v49, %s1506_s30  ;;  %597 = vrot.lane.b32.xlu1 %v1670_v51, %s1506_s30 }
 0x16e   : > { %v490_v52 = vpop.permute.xlu1 %489  ;;  %v488_v53 = vpop.permute.xlu0 %487 }
 0x16f   : > { %v1679_v55 = vmax.f32 %v1288_v21, %v488_v53  ;;  %v1685_v58 = vmax.f32 %v1289_v24, %v490_v52  ;;  %v1763_v21 = vld [vmem:[%s1979_s2] ss:$0 sm:$0xff] }
 0x171   : > { %607 = vrot.lane.b32.xlu0 %v1679_v55, %s1506_s30  ;;  %621 = vrot.lane.b32.xlu1 %v1677_v54, %s1506_s30 }
 0x172   : > { %v514_v56 = vpop.permute.xlu1 %513  ;;  %v512_v57 = vpop.permute.xlu0 %511 }
 0x173   : > { %v1688_v59 = vmax.f32 %v1588_v23, %v512_v57  ;;  %v1695_v62 = vmax.f32 %v1595_v27, %v514_v56 }
 0x175   : > { %631 = vrot.lane.b32.xlu0 %v1688_v59, %s1506_s30  ;;  %609 = vrot.lane.b32.xlu1 %v1685_v58, %s1506_s30 }
 0x176   : > { %v486_v60 = vpop.permute.xlu1 %485  ;;  %v484_v61 = vpop.permute.xlu0 %483 }
 0x177   : > { %v1698_v63 = vmax.f32 %v1586_v22, %v484_v61  ;;  %v1705_v2 = vmax.f32 %v1593_v26, %v486_v60 }
 0x179   : > { %603 = vrot.lane.b32.xlu0 %v1698_v63, %s1506_s30  ;;  %633 = vrot.lane.b32.xlu1 %v1695_v62, %s1506_s30 }
 0x17a   : > { %v510_v0 = vpop.permute.xlu1 %509  ;;  %v508_v1 = vpop.permute.xlu0 %507 }
 0x17b   : > { %v1708_v3 = vmax.f32 %v1591_v25, %v508_v1  ;;  %v1715_v6 = vmax.f32 %v1597_v28, %v510_v0 }
 0x17d   : > { %627 = vrot.lane.b32.xlu0 %v1708_v3, %s1506_s30  ;;  %605 = vrot.lane.b32.xlu1 %v1705_v2, %s1506_s30 }
 0x17e   : > { %v498_v4 = vpop.permute.xlu1 %497  ;;  %v496_v5 = vpop.permute.xlu0 %495 }
 0x17f   : > { %v1718_v7 = vmax.f32 %v1602_v29, %v496_v5  ;;  %v1725_v10 = vmax.f32 %v1610_v32, %v498_v4 }
 0x181   : > { %615 = vrot.lane.b32.xlu0 %v1718_v7, %s1506_s30  ;;  %629 = vrot.lane.b32.xlu1 %v1715_v6, %s1506_s30 }
 0x182   : > { %v494_v8 = vpop.permute.xlu1 %493  ;;  %v492_v9 = vpop.permute.xlu0 %491 }
 0x183   : > { %v1728_v11 = vmax.f32 %v1605_v30, %v492_v9  ;;  %v1735_v14 = vmax.f32 %v1614_v34, %v494_v8 }
 0x185   : > { %611 = vrot.lane.b32.xlu0 %v1728_v11, %s1506_s30  ;;  %617 = vrot.lane.b32.xlu1 %v1725_v10, %s1506_s30 }
 0x186   : > { %v516_v12 = vpop.permute.xlu0 %515  ;;  %v518_v13 = vpop.permute.xlu1 %517 }
 0x187   : > { %v1738_v15 = vmax.f32 %v1612_v33, %v516_v12  ;;  %v1745_v17 = vmax.f32 %v1618_v36, %v518_v13 }
 0x189   : > { %635 = vrot.lane.b32.xlu0 %v1738_v15, %s1506_s30  ;;  %613 = vrot.lane.b32.xlu1 %v1735_v14, %s1506_s30 }
 0x18a   : > { %v520_v16 = vpop.permute.xlu0 %519  ;;  %v522_v19 = vpop.permute.xlu1 %521 }
 0x18b   : > { %v1748_v18 = vmax.f32 %v1607_v31, %v520_v16  ;;  %v1755_v20 = vmax.f32 %v1616_v35, %v522_v19 }
 0x18d   : > { %639 = vrot.lane.b32.xlu0 %v1748_v18, %s1506_s30  ;;  %637 = vrot.lane.b32.xlu1 %v1745_v17, %s1506_s30 }
 0x191   : > { %641 = vrot.lane.b32.xlu1 %v1755_v20, %s1506_s30 }
 0x1d3   : > { %v600_v22 = vpop.permute.xlu0 %599 }
 0x1d4   : > { %v669_v23 = vmax.f32 %v1648_v39, %v600_v22 }
 0x1d6   : > { %v700_v24 = vadd.f32 %v1763_v21, %v669_v23 }
 0x1d7   : > { %v624_v25 = vpop.permute.xlu0 %623  ;;  %v602_v26 = vpop.permute.xlu1 %601 }
 0x1d8   : > { %v724_v27 = vmax.f32 %v700_v24, 0.0  ;;  %v681_v28 = vmax.f32 %v1652_v41, %v624_v25  ;;  %v670_v29 = vmax.f32 %v1654_v43, %v602_v26 }
 0x1da   : > { %v1244_v30 = vpack.c.bf16 %v724_v27, %v724_v27  ;;  %v712_v31 = vadd.f32 %v1763_v21, %v681_v28  ;;  %v701_v32 = vadd.f32 %v1763_v21, %v670_v29 }
 0x1db   : > { %v596_v33 = vpop.permute.xlu0 %595  ;;  %v626_v34 = vpop.permute.xlu1 %625 }
 0x1dc   : > { %845 = vst.msk [vmem:[%s1771_s8 + $0x8] sm:$0xf] %vm842_vm1, %v1244_v30  ;;  %v736_v35 = vmax.f32 %v712_v31, 0.0  ;;  %v725_v36 = vmax.f32 %v701_v32, 0.0  ;;  %v667_v37 = vmax.f32 %v1660_v45, %v596_v33  ;;  %v682_v38 = vmax.f32 %v1662_v47, %v626_v34 }
 0x1de   : > { %v1256_v39 = vpack.c.bf16 %v736_v35, %v736_v35  ;;  %v1245_v40 = vpack.c.bf16 %v725_v36, %v725_v36  ;;  %v698_v41 = vadd.f32 %v1763_v21, %v667_v37  ;;  %v713_v42 = vadd.f32 %v1763_v21, %v682_v38 }
 0x1df   : > { %v620_v43 = vpop.permute.xlu0 %619  ;;  %v598_v45 = vpop.permute.xlu1 %597 }
 0x1e0   : > { %857 = vst.msk [vmem:[%s1771_s8 + $0x38] sm:$0xf] %vm842_vm1, %v1256_v39  ;;  %846 = vst.msk [vmem:[%s1771_s8 + $0xc] sm:$0xf] %vm842_vm1, %v1245_v40  ;;  %v722_v44 = vmax.f32 %v698_v41, 0.0  ;;  %v737_v46 = vmax.f32 %v713_v42, 0.0  ;;  %v679_v48 = vmax.f32 %v1668_v49, %v620_v43  ;;  %v668_v47 = vmax.f32 %v1670_v51, %v598_v45 }
 0x1e2   : > { %v1242_v50 = vpack.c.bf16 %v722_v44, %v722_v44  ;;  %v1257_v52 = vpack.c.bf16 %v737_v46, %v737_v46  ;;  %v710_v53 = vadd.f32 %v1763_v21, %v679_v48  ;;  %v699_v56 = vadd.f32 %v1763_v21, %v668_v47 }
 0x1e3   : > { %v608_v60 = vpop.permute.xlu0 %607  ;;  %v622_v61 = vpop.permute.xlu1 %621 }
 0x1e4   : > { %843 = vst.msk [vmem:[%s1771_s8] sm:$0xf] %vm842_vm1, %v1242_v50  ;;  %858 = vst.msk [vmem:[%s1771_s8 + $0x3c] sm:$0xf] %vm842_vm1, %v1257_v52  ;;  %v734_v57 = vmax.f32 %v710_v53, 0.0  ;;  %v723_v0 = vmax.f32 %v699_v56, 0.0  ;;  %v673_v49 = vmax.f32 %v1679_v55, %v608_v60  ;;  %v680_v51 = vmax.f32 %v1677_v54, %v622_v61 }
 0x1e6   : > { %v1254_v1 = vpack.c.bf16 %v734_v57, %v734_v57  ;;  %v1243_v4 = vpack.c.bf16 %v723_v0, %v723_v0  ;;  %v704_v5 = vadd.f32 %v1763_v21, %v673_v49  ;;  %v711_v8 = vadd.f32 %v1763_v21, %v680_v51 }
 0x1e7   : > { %v632_v9 = vpop.permute.xlu0 %631  ;;  %v610_v12 = vpop.permute.xlu1 %609 }
 0x1e8   : > { %855 = vst.msk [vmem:[%s1771_s8 + $0x30] sm:$0xf] %vm842_vm1, %v1254_v1  ;;  %844 = vst.msk [vmem:[%s1771_s8 + $0x4] sm:$0xf] %vm842_vm1, %v1243_v4  ;;  %v728_v13 = vmax.f32 %v704_v5, 0.0  ;;  %v735_v16 = vmax.f32 %v711_v8, 0.0  ;;  %v685_v55 = vmax.f32 %v1688_v59, %v632_v9  ;;  %v674_v54 = vmax.f32 %v1685_v58, %v610_v12 }
 0x1ea   : > { %v1248_v19 = vpack.c.bf16 %v728_v13, %v728_v13  ;;  %v1255_v22 = vpack.c.bf16 %v735_v16, %v735_v16  ;;  %v716_v23 = vadd.f32 %v1763_v21, %v685_v55  ;;  %v705_v24 = vadd.f32 %v1763_v21, %v674_v54 }
 0x1eb   : > { %v604_v25 = vpop.permute.xlu0 %603  ;;  %v634_v26 = vpop.permute.xlu1 %633 }
 0x1ec   : > { %849 = vst.msk [vmem:[%s1771_s8 + $0x18] sm:$0xf] %vm842_vm1, %v1248_v19  ;;  %856 = vst.msk [vmem:[%s1771_s8 + $0x34] sm:$0xf] %vm842_vm1, %v1255_v22  ;;  %v740_v27 = vmax.f32 %v716_v23, 0.0  ;;  %v729_v28 = vmax.f32 %v705_v24, 0.0  ;;  %v671_v59 = vmax.f32 %v1698_v63, %v604_v25  ;;  %v686_v58 = vmax.f32 %v1695_v62, %v634_v26 }
 0x1ee   : > { %v1260_v29 = vpack.c.bf16 %v740_v27, %v740_v27  ;;  %v1249_v30 = vpack.c.bf16 %v729_v28, %v729_v28  ;;  %v702_v31 = vadd.f32 %v1763_v21, %v671_v59  ;;  %v717_v32 = vadd.f32 %v1763_v21, %v686_v58 }
 0x1ef   : > { %v628_v33 = vpop.permute.xlu0 %627  ;;  %v606_v34 = vpop.permute.xlu1 %605 }
 0x1f0   : > { %861 = vst.msk [vmem:[%s1771_s8 + $0x48] sm:$0xf] %vm842_vm1, %v1260_v29  ;;  %850 = vst.msk [vmem:[%s1771_s8 + $0x1c] sm:$0xf] %vm842_vm1, %v1249_v30  ;;  %v726_v35 = vmax.f32 %v702_v31, 0.0  ;;  %v741_v36 = vmax.f32 %v717_v32, 0.0  ;;  %v683_v63 = vmax.f32 %v1708_v3, %v628_v33  ;;  %v672_v62 = vmax.f32 %v1705_v2, %v606_v34 }
 0x1f2   : > { %v1246_v37 = vpack.c.bf16 %v726_v35, %v726_v35  ;;  %v1261_v38 = vpack.c.bf16 %v741_v36, %v741_v36  ;;  %v714_v39 = vadd.f32 %v1763_v21, %v683_v63  ;;  %v703_v40 = vadd.f32 %v1763_v21, %v672_v62 }
 0x1f3   : > { %v616_v41 = vpop.permute.xlu0 %615  ;;  %v630_v42 = vpop.permute.xlu1 %629 }
 0x1f4   : > { %847 = vst.msk [vmem:[%s1771_s8 + $0x10] sm:$0xf] %vm842_vm1, %v1246_v37  ;;  %862 = vst.msk [vmem:[%s1771_s8 + $0x4c] sm:$0xf] %vm842_vm1, %v1261_v38  ;;  %v738_v43 = vmax.f32 %v714_v39, 0.0  ;;  %v727_v44 = vmax.f32 %v703_v40, 0.0  ;;  %v677_v3 = vmax.f32 %v1718_v7, %v616_v41  ;;  %v684_v2 = vmax.f32 %v1715_v6, %v630_v42 }
 0x1f6   : > { %v1258_v46 = vpack.c.bf16 %v738_v43, %v738_v43  ;;  %v1247_v48 = vpack.c.bf16 %v727_v44, %v727_v44  ;;  %v708_v45 = vadd.f32 %v1763_v21, %v677_v3  ;;  %v715_v47 = vadd.f32 %v1763_v21, %v684_v2 }
 0x1f7   : > { %v612_v50 = vpop.permute.xlu0 %611  ;;  %v618_v52 = vpop.permute.xlu1 %617 }
 0x1f8   : > { %859 = vst.msk [vmem:[%s1771_s8 + $0x40] sm:$0xf] %vm842_vm1, %v1258_v46  ;;  %848 = vst.msk [vmem:[%s1771_s8 + $0x14] sm:$0xf] %vm842_vm1, %v1247_v48  ;;  %v732_v53 = vmax.f32 %v708_v45, 0.0  ;;  %v739_v56 = vmax.f32 %v715_v47, 0.0  ;;  %v675_v7 = vmax.f32 %v1728_v11, %v612_v50  ;;  %v678_v6 = vmax.f32 %v1725_v10, %v618_v52 }
 0x1fa   : > { %v1252_v57 = vpack.c.bf16 %v732_v53, %v732_v53  ;;  %v1259_v60 = vpack.c.bf16 %v739_v56, %v739_v56  ;;  %v706_v61 = vadd.f32 %v1763_v21, %v675_v7  ;;  %v709_v0 = vadd.f32 %v1763_v21, %v678_v6 }
 0x1fb   : > { %v636_v49 = vpop.permute.xlu0 %635  ;;  %v614_v51 = vpop.permute.xlu1 %613 }
 0x1fc   : > { %853 = vst.msk [vmem:[%s1771_s8 + $0x28] sm:$0xf] %vm842_vm1, %v1252_v57  ;;  %860 = vst.msk [vmem:[%s1771_s8 + $0x44] sm:$0xf] %vm842_vm1, %v1259_v60  ;;  %v730_v1 = vmax.f32 %v706_v61, 0.0  ;;  %v733_v4 = vmax.f32 %v709_v0, 0.0  ;;  %v687_v11 = vmax.f32 %v1738_v15, %v636_v49  ;;  %v676_v10 = vmax.f32 %v1735_v14, %v614_v51 }
 0x1fe   : > { %v1250_v5 = vpack.c.bf16 %v730_v1, %v730_v1  ;;  %v1253_v8 = vpack.c.bf16 %v733_v4, %v733_v4  ;;  %v718_v9 = vadd.f32 %v1763_v21, %v687_v11  ;;  %v707_v12 = vadd.f32 %v1763_v21, %v676_v10 }
 0x1ff   : > { %v640_v13 = vpop.permute.xlu0 %639  ;;  %v638_v16 = vpop.permute.xlu1 %637 }
 0x200   : > { %851 = vst.msk [vmem:[%s1771_s8 + $0x20] sm:$0xf] %vm842_vm1, %v1250_v5  ;;  %854 = vst.msk [vmem:[%s1771_s8 + $0x2c] sm:$0xf] %vm842_vm1, %v1253_v8  ;;  %v742_v55 = vmax.f32 %v718_v9, 0.0  ;;  %v731_v54 = vmax.f32 %v707_v12, 0.0  ;;  %v689_v15 = vmax.f32 %v1748_v18, %v640_v13  ;;  %v688_v14 = vmax.f32 %v1745_v17, %v638_v16 }
 0x202   : > { %v1262_v19 = vpack.c.bf16 %v742_v55, %v742_v55  ;;  %v1251_v22 = vpack.c.bf16 %v731_v54, %v731_v54  ;;  %v720_v23 = vadd.f32 %v1763_v21, %v689_v15  ;;  %v719_v24 = vadd.f32 %v1763_v21, %v688_v14 }
 0x203   : > { %v642_v25 = vpop.permute.xlu1 %641 }
 0x204   : > { %863 = vst.msk [vmem:[%s1771_s8 + $0x50] sm:$0xf] %vm842_vm1, %v1262_v19  ;;  %852 = vst.msk [vmem:[%s1771_s8 + $0x24] sm:$0xf] %vm842_vm1, %v1251_v22  ;;  %v744_v26 = vmax.f32 %v720_v23, 0.0  ;;  %v743_v27 = vmax.f32 %v719_v24, 0.0  ;;  %v690_v28 = vmax.f32 %v1755_v20, %v642_v25 }
 0x206   : > { %v1264_v18 = vpack.c.bf16 %v744_v26, %v744_v26  ;;  %v1263_v59 = vpack.c.bf16 %v743_v27, %v743_v27  ;;  %v721_v17 = vadd.f32 %v1763_v21, %v690_v28  ;;  %873 = sbr.rel (!%p1552_p4) target bundleno = 602 (0x25a), region = 36 }
 0x208   : > { %865 = vst.msk [vmem:[%s1771_s8 + $0x58] sm:$0xf] %vm842_vm1, %v1264_v18  ;;  %864 = vst.msk [vmem:[%s1771_s8 + $0x54] sm:$0xf] %vm842_vm1, %v1263_v59  ;;  %v745_v58 = vmax.f32 %v721_v17, 0.0 }
 0x20a   : > { %v1265_v29 = vpack.c.bf16 %v745_v58, %v745_v58 }
 0x20c   : > { %866 = vst.msk [vmem:[%s1771_s8 + $0x5c] sm:$0xf] %vm842_vm1, %v1265_v29 }
 0x20d   : > { %s1989_s9 = smov (!%p876_p8, %s875_s9), 24 }
 0x20e   : > { %s1230_s17 = sshll.u32 %s1989_s9, 6 }
 0x20f   : > { %p1233_p9 = scmp.eq.s32.totalorder %s1230_s17, 0 }
 0x210   : > { %1413 = sdivrem.u32 (!%p1233_p9), %s1989_s9, 24 }
 0x211   : > { %884 = sbr.rel (%p1233_p9) target bundleno = 602 (0x25a), region = 40 }
 0x219   : > { %s1876_s18 = spop.drf %1413 }
 0x21a   : > { %p1234_p10 = scmp.le.s32.totalorder %s1876_s18, 0 }
 0x21b   : > { %s1982_s15 = smov (!%p1234_p10), %s1870_s14  ;;  %s1983_s20 = smov (!%p1234_p10), %s1771_s8 }
 0x21c   : > { %1131 = sbr.rel (%p1234_p10) target bundleno = 573 (0x23d), region = 112  ;;  %s1885_s21 = smov (!%p1234_p10), 0  }
 0x21d   : > { %s1887_s22 = smov (!%p1234_p10), 0  }
 0x223 LB: >> { %v901_v20 = vld [vmem:[%s1479_s20] sm:$0xf]  ;;  %v903_v21 = vld [vmem:[%s1479_s20 + $0x4] sm:$0xf]  ;;  %v905_v30 = vld [vmem:[%s1479_s20 + $0x8] sm:$0xf]  ;;  %s1487_s22 = sphi %s1887_s22, %s895_s22   ;;  %s1483_s21 = sphi %s1885_s21, %s1984_s21   ;;  %s1479_s20 = sphi %s1983_s20, %s954_s20   ;;  %s1475_s15 = sphi %s1982_s15, %s955_s15  }
 0x224   : >> { %902 = vst [vmem:[%s1475_s15] sm:$0xf] %v901_v20  ;;  %904 = vst [vmem:[%s1475_s15 + $0x4] sm:$0xf] %v903_v21  ;;  %v907_v31 = vld [vmem:[%s1479_s20 + $0xc] sm:$0xf]  ;;  %s949_s23 = sadd.s32 1, %s1483_s21 }
 0x225   : >> { %906 = vst [vmem:[%s1475_s15 + $0x8] sm:$0xf] %v905_v30  ;;  %v909_v32 = vld [vmem:[%s1479_s20 + $0x10] sm:$0xf]  ;;  %v911_v33 = vld [vmem:[%s1479_s20 + $0x14] sm:$0xf]  ;;  %p950_p11 = scmp.ge.s32.totalorder %s949_s23, %s1876_s18 }
 0x226   : >> { %908 = vst [vmem:[%s1475_s15 + $0xc] sm:$0xf] %v907_v31  ;;  %910 = vst [vmem:[%s1475_s15 + $0x10] sm:$0xf] %v909_v32  ;;  %v913_v34 = vld [vmem:[%s1479_s20 + $0x18] sm:$0xf] }
 0x227   : >> { %912 = vst [vmem:[%s1475_s15 + $0x14] sm:$0xf] %v911_v33  ;;  %v915_v35 = vld [vmem:[%s1479_s20 + $0x1c] sm:$0xf]  ;;  %v917_v36 = vld [vmem:[%s1479_s20 + $0x20] sm:$0xf] }
 0x228   : >> { %914 = vst [vmem:[%s1475_s15 + $0x18] sm:$0xf] %v913_v34  ;;  %916 = vst [vmem:[%s1475_s15 + $0x1c] sm:$0xf] %v915_v35  ;;  %v919_v63 = vld [vmem:[%s1479_s20 + $0x24] sm:$0xf] }
 0x229   : >> { %918 = vst [vmem:[%s1475_s15 + $0x20] sm:$0xf] %v917_v36  ;;  %v921_v62 = vld [vmem:[%s1479_s20 + $0x28] sm:$0xf]  ;;  %v923_v37 = vld [vmem:[%s1479_s20 + $0x2c] sm:$0xf] }
 0x22a   : >> { %920 = vst [vmem:[%s1475_s15 + $0x24] sm:$0xf] %v919_v63  ;;  %922 = vst [vmem:[%s1475_s15 + $0x28] sm:$0xf] %v921_v62  ;;  %v925_v38 = vld [vmem:[%s1479_s20 + $0x30] sm:$0xf] }
 0x22b   : >> { %924 = vst [vmem:[%s1475_s15 + $0x2c] sm:$0xf] %v923_v37  ;;  %v927_v39 = vld [vmem:[%s1479_s20 + $0x34] sm:$0xf]  ;;  %v929_v40 = vld [vmem:[%s1479_s20 + $0x38] sm:$0xf] }
 0x22c   : >> { %926 = vst [vmem:[%s1475_s15 + $0x30] sm:$0xf] %v925_v38  ;;  %928 = vst [vmem:[%s1475_s15 + $0x34] sm:$0xf] %v927_v39  ;;  %v931_v41 = vld [vmem:[%s1479_s20 + $0x3c] sm:$0xf] }
 0x22d   : >> { %930 = vst [vmem:[%s1475_s15 + $0x38] sm:$0xf] %v929_v40  ;;  %v933_v42 = vld [vmem:[%s1479_s20 + $0x40] sm:$0xf]  ;;  %v935_v43 = vld [vmem:[%s1479_s20 + $0x44] sm:$0xf] }
 0x22e   : >> { %932 = vst [vmem:[%s1475_s15 + $0x3c] sm:$0xf] %v931_v41  ;;  %934 = vst [vmem:[%s1475_s15 + $0x40] sm:$0xf] %v933_v42  ;;  %v937_v44 = vld [vmem:[%s1479_s20 + $0x48] sm:$0xf] }
 0x22f   : >> { %936 = vst [vmem:[%s1475_s15 + $0x44] sm:$0xf] %v935_v43  ;;  %v939_v3 = vld [vmem:[%s1479_s20 + $0x4c] sm:$0xf]  ;;  %v941_v2 = vld [vmem:[%s1479_s20 + $0x50] sm:$0xf] }
 0x230   : >> { %938 = vst [vmem:[%s1475_s15 + $0x48] sm:$0xf] %v937_v44  ;;  %940 = vst [vmem:[%s1475_s15 + $0x4c] sm:$0xf] %v939_v3  ;;  %v943_v46 = vld [vmem:[%s1479_s20 + $0x54] sm:$0xf] }
 0x231   : >> { %942 = vst [vmem:[%s1475_s15 + $0x50] sm:$0xf] %v941_v2  ;;  %v945_v48 = vld [vmem:[%s1479_s20 + $0x58] sm:$0xf]  ;;  %v947_v45 = vld [vmem:[%s1479_s20 + $0x5c] sm:$0xf] }
 0x232   : >> { %944 = vst [vmem:[%s1475_s15 + $0x54] sm:$0xf] %v943_v46  ;;  %946 = vst [vmem:[%s1475_s15 + $0x58] sm:$0xf] %v945_v48  ;;  %s1991_s23 = smov (%p950_p11, %s949_s23), 0  ;;  %s895_s22 = sadd.s32 1, %s1487_s22  }
 0x233   : >> { %948 = vst [vmem:[%s1475_s15 + $0x5c] sm:$0xf] %v947_v45  ;;  %s952_s24 = smul.u32 96, %s1991_s23  ;;  %p894_p12 = scmp.ge.s32.totalorder %s895_s22, %s1876_s18 }
 0x234   : >> { %s1984_s21 = smov %s1991_s23 }
 0x235   : >> { %s954_s20 = scalar_lea.vmem %s1771_s8, %s952_s24 [#allocation2]   ;;  %s955_s15 = scalar_lea.vmem %s1870_s14, %s952_s24  }
 0x236   : > { %897 = sbr.rel (!%p894_p12) target bundleno = 547 (0x223), region = 118 }
 0x23d PF: > { %1415 = sdivrem.u32 %s1989_s9, 24 }
 0x23e   : > { %s1235_s25 = smul.u32 96, %s1876_s18 }
 0x240   : > { %s960_s26 = scalar_lea.vmem %s1771_s8, %s1235_s25 [#allocation2]   ;;  %s962_s27 = scalar_lea.vmem %s1870_s14, %s1235_s25  }
 0x246   : > { %s1416_s28 = spop.drf %1415 }
 0x247   : > { %p1237_p13 = scmp.le.s32.totalorder %s1416_s28, 0 }
 0x248   : > { %s1489_s29 = smov (!%p1237_p13), %s962_s27   ;;  %s1493_s30 = smov (!%p1237_p13), %s960_s26  }
 0x249   : > { %1145 = sbr.rel (%p1237_p13) target bundleno = 602 (0x25a), region = 123  ;;  %s1497_s4 = smov (!%p1237_p13), 0  }
 0x24a   : > { %s1501_s5 = smov (!%p1237_p13), 0  }
 0x250 LB: >> { %v972_v47 = vld [vmem:[%s1495_s30] sm:$0xf]  ;;  %s974_s6 = sadd.s32 1, %s1499_s4  ;;  %s966_s5 = sadd.s32 1, %s1503_s5   ;;  %s1503_s5 = sphi %s1501_s5, %s966_s5   ;;  %s1499_s4 = sphi %s1497_s4, %s1498_s4   ;;  %s1495_s30 = sphi %s1493_s30, %s979_s30   ;;  %s1491_s29 = sphi %s1489_s29, %s980_s29  }
 0x251   : >> { %973 = vst [vmem:[%s1491_s29] sm:$0xf] %v972_v47  ;;  %p975_p0 = scmp.ge.s32.totalorder %s974_s6, %s1416_s28  ;;  %p965_p1 = scmp.ge.s32.totalorder %s966_s5, %s1416_s28 }
 0x253   : >> { %s1993_s6 = smov (%p975_p0, %s974_s6), 0  ;;  %968 = sbr.rel (!%p965_p1) target bundleno = 592 (0x250), region = 129 }
 0x254   : >> { %s1238_s7 = sshll.u32 %s1993_s6, 2  ;;  %s1498_s4 = smov %s1993_s6  }
 0x255   : >> { %s979_s30 = scalar_lea.vmem %s960_s26, %s1238_s7 [#allocation2]   ;;  %s980_s29 = scalar_lea.vmem %s962_s27, %s1238_s7  }
 0x25a PF: > { %p10_p2 = scmp.ge.s32.totalorder %s1542_s16, 4   ;;  %s1985_s12 = smov %s1467_s13 }
 0x25b   : > { %s1986_s13 = smov %s1550_s19  ;;  %s1987_s14 = smov %s1542_s16 }
 0x25c   :  { %12 = sbr.rel (!%p10_p2) target bundleno = 2 (0x2), region = 140 }

// kernel: conv_net_forward.4
= control target key start
LH: loop header
LB: loop body
LE: loop exit
PB: predicated region body
PF: predicated region fallthrough
CT: control target
= control target key end

     0   :  { %s1028_s12 = smov 0   ;;  %s1030_s13 = smov 0   ;;  %s1183_s0 = inlined_call_operand.vmem [shape: bf16[50,256], index: 0, kind: input, shape index: {}]   ;;  %s1184_s1 = inlined_call_operand.vmem [shape: bf16[256,128], index: 1, kind: input, shape index: {}]   ;;  %s1185_s2 = inlined_call_operand.vmem [shape: f32[1,32], index: 2, kind: input, shape index: {}]   ;;  %s1186_s3 = inlined_call_operand.vmem [shape: bf16[50,32], index: 3, kind: output, shape index: {}]  }
   0x1   :  { %s1032_s14 = smov 0  }
   0x2 LB: > { %s1041_s15 = sadd.s32 4294967295, %s972_s14   ;;  %s1043_s16 = sadd.s32 1, %s972_s14   ;;  %s972_s14 = sphi %s1032_s14, %s1193_s14   ;;  %s968_s13 = sphi %s1030_s13, %s1192_s13   ;;  %s964_s12 = sphi %s1028_s12, %s1191_s12  }
   0x3   : > { %s85_s17 = ssub.s32 %s972_s14, %s1043_s16  ;;  %s88_s18 = sadd.s32 1, %s968_s13 }
   0x4   : > { %p86_p0 = scmp.eq.s32.totalorder %s85_s17, 0  ;;  %p98_p1 = scmp.ne.s32.totalorder %s968_s13, %s964_s12 }
   0x5   : > { %p99_p2 = scmp.eq.s32.totalorder %s1041_s15, 1  ;;  %p707_p3 = scmp.ge.s32.totalorder %s972_s14, 1 }
   0x6   : > { %s1051_s19 = scalar_select %p86_p0, %s968_s13, %s88_s18  }
   0x7   : > { %p1053_p4 = por %p99_p2, %p98_p1  ;;  %p149_p5 = scmp.lt.s32.totalorder %s972_s14, 3 }
   0x9   : > { %p150_p6 = pnand %p707_p3, %p149_p5 }
   0xa   : > { %v896_v0 = vld [vmem:[%s1184_s1 + $0x40] sm:$0xff] (!%p150_p6)   ;;  %s1061_s23 = sshll.u32 (!%p150_p6), %s1041_s15, 2  ;;  %v898_v2 = vld [vmem:[%s1184_s1 + $0x48] sm:$0xff] (!%p150_p6)   ;;  %v900_v4 = vld [vmem:[%s1184_s1 + $0x50] sm:$0xff] (!%p150_p6)   ;;  %s1007_s17 = smov (!%p150_p6), 64   ;;  %vm473_vm0 = vcmask (!%p150_p6), 257024  }
   0xb   : > { %153 = sbr.rel (%p150_p6) target bundleno = 560 (0x230), region = 32  ;;  %v897_v1 = vld [vmem:[%s1184_s1] sm:$0xff] (!%p150_p6)   ;;  %762 = vmatprep.subr.bf16.mxu0 (!%p150_p6), %v896_v0  ;;  %790 = vmatprep.subr.bf16.mxu1 (!%p150_p6), %v896_v0  ;;  %v899_v3 = vld [vmem:[%s1184_s1 + $0x8] sm:$0xff] (!%p150_p6)   ;;  %p184_p7 = scmp.lt.s32.totalorder (!%p150_p6), %s1061_s23, 6  ;;  %v901_v5 = vld [vmem:[%s1184_s1 + $0x10] sm:$0xff] (!%p150_p6)  }
   0xc   : > { %763 = vmatpush3.bf16.msra.mxu0 (!%p150_p6), %v897_v1  ;;  %798 = vmatpush3.bf16.msra.mxu1 (!%p150_p6), %v897_v1  ;;  %v902_v6 = vld [vmem:[%s1184_s1 + $0x58] sm:$0xff] (!%p150_p6)   ;;  %v904_v8 = vld [vmem:[%s1184_s1 + $0x60] sm:$0xff] (!%p150_p6)   ;;  %v906_v10 = vld [vmem:[%s1184_s1 + $0x68] sm:$0xff] (!%p150_p6)   ;;  %s175_s22 = sand.u32 (!%p150_p6), 1, %s964_s12  }
   0xd   : > { %764 = vmatprep.subr.bf16.mxu0 (!%p150_p6), %v898_v2  ;;  %791 = vmatprep.subr.bf16.mxu1 (!%p150_p6), %v898_v2  ;;  %v903_v7 = vld [vmem:[%s1184_s1 + $0x18] sm:$0xff] (!%p150_p6)   ;;  %v905_v9 = vld [vmem:[%s1184_s1 + $0x20] sm:$0xff] (!%p150_p6)   ;;  %v907_v13 = vld [vmem:[%s1184_s1 + $0x28] sm:$0xff] (!%p150_p6)  }
   0xe   : > { %v908_v14 = vld [vmem:[%s1184_s1 + $0x70] sm:$0xff] (!%p150_p6)   ;;  %v910_v16 = vld [vmem:[%s1184_s1 + $0x78] sm:$0xff] (!%p150_p6)   ;;  %v732_v40 = vld [vmem:[%s1185_s2] ss:$0 sm:$0xff] (!%p150_p6) }
   0xf   : > { %v909_v15 = vld [vmem:[%s1184_s1 + $0x30] sm:$0xff] (!%p150_p6)   ;;  %v911_v17 = vld [vmem:[%s1184_s1 + $0x38] sm:$0xff] (!%p150_p6)  }
  0x10   : > { %765 = vmatpush3.bf16.msra.mxu0 (!%p150_p6), %v899_v3  ;;  %799 = vmatpush3.bf16.msra.mxu1 (!%p150_p6), %v899_v3 }
  0x11   : > { %766 = vmatprep.subr.bf16.mxu0 (!%p150_p6), %v900_v4  ;;  %792 = vmatprep.subr.bf16.mxu1 (!%p150_p6), %v900_v4 }
  0x12   : > { %s185_s7 = scalar_select %p184_p7, %s1061_s23, 6 }
  0x13   : > { %s486_s12 = ssub.s32 (%p1053_p4), 7, %s1061_s23  ;;  %s759_s26 = sshll.u32 (%p1053_p4), %s1041_s15, 4 }
  0x14   : > { %767 = vmatpush3.bf16.msra.mxu0 %v901_v5  ;;  %800 = vmatpush3.bf16.msra.mxu1 %v901_v5  ;;  %s754_s14 = sshll.u32 %s185_s7, 3  ;;  %p487_p8 = scmp.lt.s32.totalorder (%p1053_p4), %s486_s12, 4 }
  0x15   : > { %768 = vmatprep.subr.bf16.mxu0 %v902_v6  ;;  %793 = vmatprep.subr.bf16.mxu1 %v902_v6  ;;  %s188_s24 = scalar_lea.vmem %s1183_s0, %s754_s14  ;;  %s1006_s14 = smov 96  }
  0x16   : > { %v914_v11 = vld [vmem:[%s188_s24 + $0x4] ss:$8 sps:$4 sm:$0xff]   ;;  %v917_v12 = vld [vmem:[%s188_s24 + $0x14] ss:$8 sps:$4 sm:$0xff]   ;;  %v912_v18 = vld [vmem:[%s188_s24] ss:$8 sps:$4 sm:$0xff]   ;;  %s1134_s29 = scalar_lea.vmem (%p1053_p4), %s1186_s3, %s759_s26  }
  0x17   : > { %385 = vmatprep.mubr.bf16.mxu0 %v914_v11  ;;  %393 = vmatprep.mubr.bf16.mxu1 %v917_v12  ;;  %v915_v19 = vld [vmem:[%s188_s24 + $0x10] ss:$8 sps:$4 sm:$0xff]   ;;  %s708_s24 = sshll.u32 %s175_s22, 4 }
  0x18   : > { %769 = vmatpush3.bf16.msra.mxu0 %v903_v7  ;;  %801 = vmatpush3.bf16.msra.mxu1 %v903_v7  ;;  %s1117_s25 = scalar_lea.vmem [#allocation2], %s708_s24  }
  0x19   : > { %770 = vmatprep.subr.bf16.mxu0 %v904_v8  ;;  %794 = vmatprep.subr.bf16.mxu1 %v904_v8 }
  0x1c   : > { %771 = vmatpush3.bf16.msra.mxu0 %v905_v9  ;;  %802 = vmatpush3.bf16.msra.mxu1 %v905_v9 }
  0x1d   : > { %772 = vmatprep.subr.bf16.mxu0 %v906_v10  ;;  %795 = vmatprep.subr.bf16.mxu1 %v906_v10 }
  0x20   : > { %773 = vmatpush3.bf16.msra.mxu0 %v907_v13  ;;  %803 = vmatpush3.bf16.msra.mxu1 %v907_v13 }
  0x21   : > { %774 = vmatprep.subr.bf16.mxu0 %v908_v14  ;;  %796 = vmatprep.subr.bf16.mxu1 %v908_v14 }
  0x24   : > { %775 = vmatpush3.bf16.msra.mxu0 %v909_v15  ;;  %804 = vmatpush3.bf16.msra.mxu1 %v909_v15 }
  0x25   : > { %776 = vmatprep.subr.bf16.mxu0 %v910_v16  ;;  %797 = vmatprep.subr.bf16.mxu1 %v910_v16 }
  0x28   : > { %777 = vmatpush3.bf16.msra.mxu0 %v911_v17  ;;  %805 = vmatpush3.bf16.msra.mxu1 %v911_v17 }
  0x2b   : > { %386 = vmatmul.mubr.bf16.vlgmr.msra.gmra.mrb[0].mxu0 %v912_v18  ;;  %394 = vmatmul.mubr.bf16.vlgmr.msra.gmra.mrb[0].mxu1 %v915_v19 }
  0xfe   : > { %v778_v20 = vpop.f32.mrb[0].mxu0  ;;  %v784_v21 = vpop.f32.mrb[0].mxu1 }
  0xff   : > { %v779_v22 = vpop.f32.mrb[1].mxu0  ;;  %v785_v23 = vpop.f32.mrb[1].mxu1 }
 0x100   : > { %v780_v24 = vadd.f32 %v779_v22, %v778_v20  ;;  %v786_v25 = vadd.f32 %v785_v23, %v784_v21  ;;  %v781_v26 = vpop.f32.mrb[2].mxu0  ;;  %v787_v27 = vpop.f32.mrb[2].mxu1 }
 0x101   : > { %v782_v28 = vpop.f32.mrb[3].mxu0  ;;  %v788_v29 = vpop.f32.mrb[3].mxu1 }
 0x102   : > { %v783_v30 = vadd.f32 %v782_v28, %v781_v26  ;;  %v789_v31 = vadd.f32 %v788_v29, %v787_v27  ;;  %410 = vrot.lane.b32.xlu1 %v786_v25, %s1006_s14  ;;  %406 = vrot.lane.b32.xlu0 %v780_v24, %s1006_s14 }
 0x106   : > { %412 = vrot.lane.b32.xlu1 %v789_v31, %s1006_s14  ;;  %408 = vrot.lane.b32.xlu0 %v783_v30, %s1006_s14 }
 0x174   : > { %v411_v32 = vpop.permute.xlu1 %410  ;;  %v407_v33 = vpop.permute.xlu0 %406 }
 0x175   : > { %v418_v34 = vmax.f32 %v780_v24, %v407_v33  ;;  %v420_v36 = vmax.f32 %v786_v25, %v411_v32 }
 0x177   : > { %426 = vrot.lane.b32.xlu0 %v418_v34, %s1007_s17 }
 0x178   : > { %v409_v35 = vpop.permute.xlu0 %408  ;;  %v413_v38 = vpop.permute.xlu1 %412 }
 0x179   : > { %v419_v37 = vmax.f32 %v783_v30, %v409_v35  ;;  %v421_v39 = vmax.f32 %v789_v31, %v413_v38 }
 0x17b   : > { %430 = vrot.lane.b32.xlu0 %v420_v36, %s1007_s17  ;;  %428 = vrot.lane.b32.xlu1 %v419_v37, %s1007_s17 }
 0x17f   : > { %432 = vrot.lane.b32.xlu1 %v421_v39, %s1007_s17 }
 0x1e9   : > { %v427_v41 = vpop.permute.xlu0 %426 }
 0x1ea   : > { %v438_v42 = vmax.f32 %v418_v34, %v427_v41 }
 0x1ec   : > { %v449_v43 = vadd.f32 %v732_v40, %v438_v42 }
 0x1ed   : > { %v429_v44 = vpop.permute.xlu1 %428  ;;  %v431_v45 = vpop.permute.xlu0 %430 }
 0x1ee   : > { %v453_v46 = vmax.f32 %v449_v43, 0.0  ;;  %v439_v47 = vmax.f32 %v419_v37, %v429_v44  ;;  %v440_v48 = vmax.f32 %v420_v36, %v431_v45 }
 0x1f0   : > { %v755_v49 = vpack.c.bf16 %v453_v46, %v453_v46  ;;  %v450_v50 = vadd.f32 %v732_v40, %v439_v47  ;;  %v451_v51 = vadd.f32 %v732_v40, %v440_v48 }
 0x1f1   : > { %v433_v52 = vpop.permute.xlu1 %432 }
 0x1f2   : > { %474 = vst.msk [vmem:[%s1117_s25] sm:$0xf] %vm473_vm0, %v755_v49  ;;  %v454_v53 = vmax.f32 %v450_v50, 0.0  ;;  %v455_v54 = vmax.f32 %v451_v51, 0.0  ;;  %v441_v55 = vmax.f32 %v421_v39, %v433_v52 }
 0x1f4   : > { %v756_v56 = vpack.c.bf16 %v454_v53, %v454_v53  ;;  %v757_v57 = vpack.c.bf16 %v455_v54, %v455_v54  ;;  %v452_v58 = vadd.f32 %v732_v40, %v441_v55  ;;  %484 = sbr.rel (!%p1053_p4) target bundleno = 560 (0x230), region = 36 }
 0x1f6   : > { %475 = vst.msk [vmem:[%s1117_s25 + $0x4] sm:$0xf] %vm473_vm0, %v756_v56  ;;  %476 = vst.msk [vmem:[%s1117_s25 + $0x8] sm:$0xf] %vm473_vm0, %v757_v57  ;;  %v456_v59 = vmax.f32 %v452_v58, 0.0 }
 0x1f8   : > { %v758_v60 = vpack.c.bf16 %v456_v59, %v456_v59 }
 0x1fa   : > { %477 = vst.msk [vmem:[%s1117_s25 + $0xc] sm:$0xf] %vm473_vm0, %v758_v60 }
 0x1fb   : > { %s1195_s12 = smov (!%p487_p8, %s486_s12), 4 }
 0x1fc   : > { %s739_s30 = sshll.u32 %s1195_s12, 6 }
 0x1fd   : > { %p742_p9 = scmp.eq.s32.totalorder %s739_s30, 0 }
 0x1fe   : > { %s1140_s4 = sshrl.u32 (!%p742_p9), %s1195_s12, 2 }
 0x1ff   : > { %495 = sbr.rel (%p742_p9) target bundleno = 560 (0x230), region = 40  ;;  %p743_p10 = scmp.le.s32.totalorder (!%p742_p9), %s1140_s4, 0 }
 0x206   : > { %660 = sbr.rel (%p743_p10) target bundleno = 539 (0x21b), region = 112  ;;  %s1188_s15 = smov (!%p743_p10), %s1134_s29 }
 0x207   : > { %s1189_s20 = smov (!%p743_p10), %s1117_s25  ;;  %s1149_s23 = smov (!%p743_p10), 0  }
 0x208   : > { %s986_s5 = smov (!%p743_p10), 0  }
 0x20d LB: >> { %v511_v61 = vld [vmem:[%s980_s20] sm:$0xf]  ;;  %v513_v62 = vld [vmem:[%s980_s20 + $0x4] sm:$0xf]  ;;  %v515_v63 = vld [vmem:[%s980_s20 + $0x8] sm:$0xf]  ;;  %s988_s5 = sphi %s986_s5, %s505_s5   ;;  %s984_s23 = sphi %s1149_s23, %s1190_s23   ;;  %s980_s20 = sphi %s1189_s20, %s524_s20   ;;  %s976_s15 = sphi %s1188_s15, %s525_s15  }
 0x20e   : >> { %512 = vst [vmem:[%s976_s15] sm:$0xf] %v511_v61  ;;  %514 = vst [vmem:[%s976_s15 + $0x4] sm:$0xf] %v513_v62  ;;  %v517_v0 = vld [vmem:[%s980_s20 + $0xc] sm:$0xf]  ;;  %s519_s6 = sadd.s32 1, %s984_s23 }
 0x20f   : >> { %516 = vst [vmem:[%s976_s15 + $0x8] sm:$0xf] %v515_v63  ;;  %518 = vst [vmem:[%s976_s15 + $0xc] sm:$0xf] %v517_v0  ;;  %p520_p11 = scmp.ge.s32.totalorder %s519_s6, %s1140_s4  ;;  %s505_s5 = sadd.s32 1, %s988_s5  }
 0x210   : >> { %p504_p12 = scmp.ge.s32.totalorder %s505_s5, %s1140_s4 }
 0x211   : >> { %s1197_s6 = smov (%p520_p11, %s519_s6), 0 }
 0x212   : >> { %s744_s7 = sshll.u32 %s1197_s6, 4  ;;  %s1190_s23 = smov %s1197_s6 }
 0x213   : >> { %s524_s20 = scalar_lea.vmem %s1117_s25, %s744_s7 [#allocation2]   ;;  %s525_s15 = scalar_lea.vmem %s1134_s29, %s744_s7  }
 0x214   : > { %507 = sbr.rel (!%p504_p12) target bundleno = 525 (0x20d), region = 118 }
 0x21b PF: > { %s1165_s8 = sand.u32 3, %s1195_s12   ;;  %s760_s9 = sshll.u32 %s1140_s4, 4 }
 0x21c   : > { %s530_s10 = scalar_lea.vmem %s1117_s25, %s760_s9 [#allocation2]   ;;  %s532_s11 = scalar_lea.vmem %s1134_s29, %s760_s9  }
 0x21d   : > { %p749_p13 = scmp.le.s32.totalorder %s1165_s8, 0 }
 0x21e   : > { %s990_s14 = smov (!%p749_p13), %s532_s11   ;;  %s994_s17 = smov (!%p749_p13), %s530_s10  }
 0x21f   : > { %674 = sbr.rel (%p749_p13) target bundleno = 560 (0x230), region = 123  ;;  %s998_s18 = smov (!%p749_p13), 0  }
 0x220   : > { %s1002_s21 = smov (!%p749_p13), 0  }
 0x226 LB: >> { %v542_v1 = vld [vmem:[%s996_s17] sm:$0xf]  ;;  %s544_s22 = sadd.s32 1, %s1000_s18  ;;  %s536_s21 = sadd.s32 1, %s1004_s21   ;;  %s1004_s21 = sphi %s1002_s21, %s536_s21   ;;  %s1000_s18 = sphi %s998_s18, %s999_s18   ;;  %s996_s17 = sphi %s994_s17, %s549_s17   ;;  %s992_s14 = sphi %s990_s14, %s550_s14  }
 0x227   : >> { %543 = vst [vmem:[%s992_s14] sm:$0xf] %v542_v1  ;;  %p545_p0 = scmp.ge.s32.totalorder %s544_s22, %s1165_s8  ;;  %p535_p1 = scmp.ge.s32.totalorder %s536_s21, %s1165_s8 }
 0x229   : >> { %s1199_s22 = smov (%p545_p0, %s544_s22), 0  ;;  %538 = sbr.rel (!%p535_p1) target bundleno = 550 (0x226), region = 129 }
 0x22a   : >> { %s750_s24 = sshll.u32 %s1199_s22, 2  ;;  %s999_s18 = smov %s1199_s22  }
 0x22b   : >> { %s549_s17 = scalar_lea.vmem %s530_s10, %s750_s24 [#allocation2]   ;;  %s550_s14 = scalar_lea.vmem %s532_s11, %s750_s24  }
 0x230 PF: > { %p10_p2 = scmp.ge.s32.totalorder %s1043_s16, 4   ;;  %s1191_s12 = smov %s968_s13 }
 0x231   : > { %s1192_s13 = smov %s1051_s19  ;;  %s1193_s14 = smov %s1043_s16 }
 0x232   :  { %12 = sbr.rel (!%p10_p2) target bundleno = 2 (0x2), region = 140 }

// kernel: conv_net_forward.5
= control target key start
LH: loop header
LB: loop body
LE: loop exit
PB: predicated region body
PF: predicated region fallthrough
CT: control target
= control target key end

     0   :  { %v1692_v38 = vmov 1966171168   ;;  %v169_v40 = vlaneseq  ;;  %s2216_s0 = inlined_call_operand.vmem [shape: bf16[2,512], index: 0, kind: input, shape index: {}]   ;;  %s2217_s1 = inlined_call_operand.vmem [shape: bf16[512,512], index: 1, kind: input, shape index: {}]   ;;  %s2218_s2 = inlined_call_operand.vmem [shape: f32[1,128], index: 2, kind: input, shape index: {}]   ;;  %s2219_s3 = inlined_call_operand.vmem [shape: bf16[128,128], index: 3, kind: input, shape index: {}]   ;;  %s2220_s4 = inlined_call_operand.vmem [shape: f32[1,128], index: 4, kind: input, shape index: {}]   ;;  %s2221_s5 = inlined_call_operand.vmem [shape: bf16[128,128], index: 5, kind: input, shape index: {}]   ;;  %s2222_s6 = inlined_call_operand.vmem [shape: f32[1,128], index: 6, kind: input, shape index: {}]   ;;  %s2223_s7 = inlined_call_operand.hbm [shape: f32[2,128], index: 7, kind: output, shape index: {}]  }
   0x1   :  { %v1460_v0 = vld [vmem:[%s2217_s1 + $0x4] ss:$16 sps:$4 sm:$0xff]   ;;  %v1462_v1 = vld [vmem:[%s2217_s1 + $0xc] ss:$16 sps:$4 sm:$0xff]   ;;  %v1464_v2 = vld [vmem:[%s2217_s1] ss:$16 sps:$4 sm:$0xff]   ;;  %v167_v39 = vunpack.c.l.s4 %v1692_v38 }
   0x2   :  { %826 = vmatprep.subr.bf16.mxu0 %v1460_v0  ;;  %v1465_v3 = vld [vmem:[%s2217_s1 + $0x8] ss:$16 sps:$4 sm:$0xff]   ;;  %908 = vmatprep.subr.bf16.mxu1 %v1462_v1  ;;  %v1466_v4 = vld [vmem:[%s2217_s1 + $0x24] ss:$16 sps:$4 sm:$0xff]   ;;  %v1468_v5 = vld [vmem:[%s2217_s1 + $0x2c] ss:$16 sps:$4 sm:$0xff]  }
   0x3   :  { %827 = vmatpush1.bf16.msra.mxu0 %v1464_v2  ;;  %909 = vmatpush1.bf16.msra.mxu1 %v1465_v3  ;;  %v1470_v6 = vld [vmem:[%s2217_s1 + $0x20] ss:$16 sps:$4 sm:$0xff]   ;;  %v1471_v7 = vld [vmem:[%s2217_s1 + $0x28] ss:$16 sps:$4 sm:$0xff]   ;;  %v1472_v8 = vld [vmem:[%s2217_s1 + $0x44] ss:$16 sps:$4 sm:$0xff]   ;;  %v168_v45 = vunpack.c.0.s8 %v167_v39 }
   0x4   :  { %828 = vmatprep.subr.bf16.mxu0 %v1466_v4  ;;  %910 = vmatprep.subr.bf16.mxu1 %v1468_v5  ;;  %v1474_v9 = vld [vmem:[%s2217_s1 + $0x4c] ss:$16 sps:$4 sm:$0xff]   ;;  %v1476_v10 = vld [vmem:[%s2217_s1 + $0x40] ss:$16 sps:$4 sm:$0xff]   ;;  %v1477_v11 = vld [vmem:[%s2217_s1 + $0x48] ss:$16 sps:$4 sm:$0xff]  }
   0x5   :  { %v1478_v12 = vld [vmem:[%s2217_s1 + $0x64] ss:$16 sps:$4 sm:$0xff]   ;;  %v1480_v13 = vld [vmem:[%s2217_s1 + $0x6c] ss:$16 sps:$4 sm:$0xff]   ;;  %v1482_v14 = vld [vmem:[%s2217_s1 + $0x60] ss:$16 sps:$4 sm:$0xff]  }
   0x6   :  { %v1483_v15 = vld [vmem:[%s2217_s1 + $0x68] ss:$16 sps:$4 sm:$0xff]   ;;  %v1484_v16 = vld [vmem:[%s2217_s1 + $0x84] ss:$16 sps:$4 sm:$0xff]   ;;  %v1486_v17 = vld [vmem:[%s2217_s1 + $0x8c] ss:$16 sps:$4 sm:$0xff]  }
   0x7   :  { %829 = vmatpush1.bf16.msra.mxu0 %v1470_v6  ;;  %911 = vmatpush1.bf16.msra.mxu1 %v1471_v7  ;;  %v1488_v18 = vld [vmem:[%s2217_s1 + $0x80] ss:$16 sps:$4 sm:$0xff]   ;;  %v1489_v19 = vld [vmem:[%s2217_s1 + $0x88] ss:$16 sps:$4 sm:$0xff]   ;;  %v1490_v20 = vld [vmem:[%s2217_s1 + $0xa4] ss:$16 sps:$4 sm:$0xff]  }
   0x8   :  { %830 = vmatprep.subr.bf16.mxu0 %v1472_v8  ;;  %912 = vmatprep.subr.bf16.mxu1 %v1474_v9  ;;  %v1492_v21 = vld [vmem:[%s2217_s1 + $0xac] ss:$16 sps:$4 sm:$0xff]   ;;  %v1494_v22 = vld [vmem:[%s2217_s1 + $0xa0] ss:$16 sps:$4 sm:$0xff]   ;;  %v1495_v23 = vld [vmem:[%s2217_s1 + $0xa8] ss:$16 sps:$4 sm:$0xff]  }
   0x9   :  { %v1496_v24 = vld [vmem:[%s2217_s1 + $0xc4] ss:$16 sps:$4 sm:$0xff]   ;;  %v1498_v25 = vld [vmem:[%s2217_s1 + $0xcc] ss:$16 sps:$4 sm:$0xff]   ;;  %v1500_v26 = vld [vmem:[%s2217_s1 + $0xc0] ss:$16 sps:$4 sm:$0xff]  }
   0xa   :  { %v1501_v27 = vld [vmem:[%s2217_s1 + $0xc8] ss:$16 sps:$4 sm:$0xff]   ;;  %v1502_v28 = vld [vmem:[%s2217_s1 + $0xe4] ss:$16 sps:$4 sm:$0xff]   ;;  %v1504_v29 = vld [vmem:[%s2217_s1 + $0xec] ss:$16 sps:$4 sm:$0xff]  }
   0xb   :  { %831 = vmatpush1.bf16.msra.mxu0 %v1476_v10  ;;  %913 = vmatpush1.bf16.msra.mxu1 %v1477_v11  ;;  %v1506_v30 = vld [vmem:[%s2217_s1 + $0xe0] ss:$16 sps:$4 sm:$0xff]   ;;  %v1507_v31 = vld [vmem:[%s2217_s1 + $0xe8] ss:$16 sps:$4 sm:$0xff]   ;;  %v1508_v32 = vld [vmem:[%s2217_s1 + $0x104] ss:$16 sps:$4 sm:$0xff]  }
   0xc   :  { %832 = vmatprep.subr.bf16.mxu0 %v1478_v12  ;;  %914 = vmatprep.subr.bf16.mxu1 %v1480_v13  ;;  %v1510_v33 = vld [vmem:[%s2217_s1 + $0x10c] ss:$16 sps:$4 sm:$0xff]   ;;  %v1512_v34 = vld [vmem:[%s2217_s1 + $0x100] ss:$16 sps:$4 sm:$0xff]   ;;  %v1513_v35 = vld [vmem:[%s2217_s1 + $0x108] ss:$16 sps:$4 sm:$0xff]  }
   0xd   :  { %v1514_v36 = vld [vmem:[%s2217_s1 + $0x124] ss:$16 sps:$4 sm:$0xff]   ;;  %v1516_v37 = vld [vmem:[%s2217_s1 + $0x12c] ss:$16 sps:$4 sm:$0xff]   ;;  %v1518_v41 = vld [vmem:[%s2217_s1 + $0x120] ss:$16 sps:$4 sm:$0xff]  }
   0xe   :  { %v1519_v42 = vld [vmem:[%s2217_s1 + $0x128] ss:$16 sps:$4 sm:$0xff]   ;;  %v1520_v43 = vld [vmem:[%s2217_s1 + $0x144] ss:$16 sps:$4 sm:$0xff]   ;;  %v1522_v44 = vld [vmem:[%s2217_s1 + $0x14c] ss:$16 sps:$4 sm:$0xff]  }
   0xf   :  { %833 = vmatpush1.bf16.msra.mxu0 %v1482_v14  ;;  %915 = vmatpush1.bf16.msra.mxu1 %v1483_v15  ;;  %v170_v46 = vshrl.u32 %v169_v40, 7  ;;  %v1524_v47 = vld [vmem:[%s2217_s1 + $0x140] ss:$16 sps:$4 sm:$0xff]   ;;  %v1525_v48 = vld [vmem:[%s2217_s1 + $0x148] ss:$16 sps:$4 sm:$0xff]  }
  0x10   :  { %834 = vmatprep.subr.bf16.mxu0 %v1484_v16  ;;  %916 = vmatprep.subr.bf16.mxu1 %v1486_v17  ;;  %v1526_v49 = vld [vmem:[%s2217_s1 + $0x164] ss:$16 sps:$4 sm:$0xff]   ;;  %v1528_v50 = vld [vmem:[%s2217_s1 + $0x16c] ss:$16 sps:$4 sm:$0xff]   ;;  %v1530_v53 = vld [vmem:[%s2217_s1 + $0x160] ss:$16 sps:$4 sm:$0xff]  }
  0x11   :  { %v171_v51 = vsub.s32 %v168_v45, %v170_v46  ;;  %v1242_v52 = vld.sshfl [vmem:[%s2216_s0] sm:$0x33 pattern:$0x75316420]  ;;  %v1531_v54 = vld [vmem:[%s2217_s1 + $0x168] ss:$16 sps:$4 sm:$0xff]  }
  0x12   :  { %v165_v55 = vcombine.high %v1242_v52, %v1242_v52  ;;  %v1532_v56 = vld [vmem:[%s2217_s1 + $0x184] ss:$16 sps:$4 sm:$0xff]   ;;  %v1534_v57 = vld [vmem:[%s2217_s1 + $0x18c] ss:$16 sps:$4 sm:$0xff]   ;;  %v1536_v59 = vld [vmem:[%s2217_s1 + $0x180] ss:$16 sps:$4 sm:$0xff]  }
  0x13   :  { %835 = vmatpush1.bf16.msra.mxu0 %v1488_v18  ;;  %917 = vmatpush1.bf16.msra.mxu1 %v1489_v19  ;;  %v1537_v60 = vld [vmem:[%s2217_s1 + $0x188] ss:$16 sps:$4 sm:$0xff]   ;;  %v1538_v61 = vld [vmem:[%s2217_s1 + $0x1a4] ss:$16 sps:$4 sm:$0xff]   ;;  %v1540_v62 = vld [vmem:[%s2217_s1 + $0x1ac] ss:$16 sps:$4 sm:$0xff]   ;;  %v1940_v12 = vrot.slane %v1242_v52, %v171_v51 }
  0x14   :  { %836 = vmatprep.subr.bf16.mxu0 %v1490_v20  ;;  %918 = vmatprep.subr.bf16.mxu1 %v1492_v21  ;;  %v179_v58 = vrot.slane %v165_v55, %v171_v51  ;;  %v1542_v63 = vld [vmem:[%s2217_s1 + $0x1a0] ss:$16 sps:$4 sm:$0xff]   ;;  %v1543_v0 = vld [vmem:[%s2217_s1 + $0x1a8] ss:$16 sps:$4 sm:$0xff]   ;;  %v1544_v1 = vld [vmem:[%s2217_s1 + $0x1c4] ss:$16 sps:$4 sm:$0xff]  }
  0x15   :  { %v1546_v2 = vld [vmem:[%s2217_s1 + $0x1cc] ss:$16 sps:$4 sm:$0xff]   ;;  %v1548_v3 = vld [vmem:[%s2217_s1 + $0x1c0] ss:$16 sps:$4 sm:$0xff]   ;;  %v1549_v4 = vld [vmem:[%s2217_s1 + $0x1c8] ss:$16 sps:$4 sm:$0xff]  }
  0x16   :  { %858 = vmatprep.mubr.bf16.mxu0 %v179_v58  ;;  %940 = vmatprep.mubr.bf16.mxu1 %v179_v58  ;;  %v1550_v5 = vld [vmem:[%s2217_s1 + $0x1e4] ss:$16 sps:$4 sm:$0xff]   ;;  %v1552_v6 = vld [vmem:[%s2217_s1 + $0x1ec] ss:$16 sps:$4 sm:$0xff]   ;;  %v1554_v7 = vld [vmem:[%s2217_s1 + $0x1e0] ss:$16 sps:$4 sm:$0xff]   ;;  %v181_v16 = vcombine.high %v179_v58, %v179_v58 }
  0x17   :  { %837 = vmatpush1.bf16.msra.mxu0 %v1494_v22  ;;  %919 = vmatpush1.bf16.msra.mxu1 %v1495_v23  ;;  %v1555_v8 = vld [vmem:[%s2217_s1 + $0x1e8] ss:$16 sps:$4 sm:$0xff]   ;;  %v1558_v9 = vld [vmem:[%s2217_s1 + $0x204] ss:$16 sps:$4 sm:$0xff]   ;;  %v1561_v10 = vld [vmem:[%s2217_s1 + $0x20c] ss:$16 sps:$4 sm:$0xff]  }
  0x18   :  { %838 = vmatprep.subr.bf16.mxu0 %v1496_v24  ;;  %920 = vmatprep.subr.bf16.mxu1 %v1498_v25  ;;  %v1556_v11 = vld [vmem:[%s2217_s1 + $0x200] ss:$16 sps:$4 sm:$0xff]   ;;  %v1559_v13 = vld [vmem:[%s2217_s1 + $0x208] ss:$16 sps:$4 sm:$0xff]   ;;  %v1564_v14 = vld [vmem:[%s2217_s1 + $0x224] ss:$16 sps:$4 sm:$0xff]  }
  0x19   :  { %v1567_v15 = vld [vmem:[%s2217_s1 + $0x22c] ss:$16 sps:$4 sm:$0xff]   ;;  %v1562_v17 = vld [vmem:[%s2217_s1 + $0x220] ss:$16 sps:$4 sm:$0xff]   ;;  %v1565_v18 = vld [vmem:[%s2217_s1 + $0x228] ss:$16 sps:$4 sm:$0xff]  }
  0x1a   :  { %v1570_v19 = vld [vmem:[%s2217_s1 + $0x244] ss:$16 sps:$4 sm:$0xff]   ;;  %v1573_v20 = vld [vmem:[%s2217_s1 + $0x24c] ss:$16 sps:$4 sm:$0xff]   ;;  %v1568_v21 = vld [vmem:[%s2217_s1 + $0x240] ss:$16 sps:$4 sm:$0xff]  }
  0x1b   :  { %839 = vmatpush1.bf16.msra.mxu0 %v1500_v26  ;;  %921 = vmatpush1.bf16.msra.mxu1 %v1501_v27  ;;  %v1571_v22 = vld [vmem:[%s2217_s1 + $0x248] ss:$16 sps:$4 sm:$0xff]   ;;  %v1576_v23 = vld [vmem:[%s2217_s1 + $0x264] ss:$16 sps:$4 sm:$0xff]   ;;  %v1579_v24 = vld [vmem:[%s2217_s1 + $0x26c] ss:$16 sps:$4 sm:$0xff]  }
  0x1c   :  { %840 = vmatprep.subr.bf16.mxu0 %v1502_v28  ;;  %922 = vmatprep.subr.bf16.mxu1 %v1504_v29  ;;  %v1574_v25 = vld [vmem:[%s2217_s1 + $0x260] ss:$16 sps:$4 sm:$0xff]   ;;  %v1577_v26 = vld [vmem:[%s2217_s1 + $0x268] ss:$16 sps:$4 sm:$0xff]   ;;  %v1582_v27 = vld [vmem:[%s2217_s1 + $0x284] ss:$16 sps:$4 sm:$0xff]  }
  0x1d   :  { %v1585_v28 = vld [vmem:[%s2217_s1 + $0x28c] ss:$16 sps:$4 sm:$0xff]   ;;  %v1580_v29 = vld [vmem:[%s2217_s1 + $0x280] ss:$16 sps:$4 sm:$0xff]   ;;  %v1595_v38 = vld [vmem:[%s2217_s1 + $0x2c8] ss:$16 sps:$4 sm:$0xff]  }
  0x1e   :  { %v1600_v39 = vld [vmem:[%s2217_s1 + $0x2e4] ss:$16 sps:$4 sm:$0xff]   ;;  %v1603_v40 = vld [vmem:[%s2217_s1 + $0x2ec] ss:$16 sps:$4 sm:$0xff]   ;;  %v1604_v45 = vld [vmem:[%s2217_s1 + $0x300] ss:$16 sps:$4 sm:$0xff]  }
  0x1f   :  { %841 = vmatpush1.bf16.msra.mxu0 %v1506_v30  ;;  %923 = vmatpush1.bf16.msra.mxu1 %v1507_v31  ;;  %v1583_v30 = vld [vmem:[%s2217_s1 + $0x288] ss:$16 sps:$4 sm:$0xff]   ;;  %v1588_v31 = vld [vmem:[%s2217_s1 + $0x2a4] ss:$16 sps:$4 sm:$0xff]  }
  0x20   :  { %842 = vmatprep.subr.bf16.mxu0 %v1508_v32  ;;  %924 = vmatprep.subr.bf16.mxu1 %v1510_v33  ;;  %v1591_v32 = vld [vmem:[%s2217_s1 + $0x2ac] ss:$16 sps:$4 sm:$0xff]   ;;  %v1586_v33 = vld [vmem:[%s2217_s1 + $0x2a0] ss:$16 sps:$4 sm:$0xff]   ;;  %v1607_v46 = vld [vmem:[%s2217_s1 + $0x308] ss:$16 sps:$4 sm:$0xff]  }
  0x23   :  { %843 = vmatpush1.bf16.msra.mxu0 %v1512_v34  ;;  %925 = vmatpush1.bf16.msra.mxu1 %v1513_v35  ;;  %v1589_v34 = vld [vmem:[%s2217_s1 + $0x2a8] ss:$16 sps:$4 sm:$0xff]   ;;  %v1594_v35 = vld [vmem:[%s2217_s1 + $0x2c4] ss:$16 sps:$4 sm:$0xff]  }
  0x24   :  { %844 = vmatprep.subr.bf16.mxu0 %v1514_v36  ;;  %926 = vmatprep.subr.bf16.mxu1 %v1516_v37  ;;  %v1597_v36 = vld [vmem:[%s2217_s1 + $0x2cc] ss:$16 sps:$4 sm:$0xff]   ;;  %v1592_v37 = vld [vmem:[%s2217_s1 + $0x2c0] ss:$16 sps:$4 sm:$0xff]  }
  0x27   :  { %845 = vmatpush1.bf16.msra.mxu0 %v1518_v41  ;;  %927 = vmatpush1.bf16.msra.mxu1 %v1519_v42  ;;  %v1598_v41 = vld [vmem:[%s2217_s1 + $0x2e0] ss:$16 sps:$4 sm:$0xff]   ;;  %v1601_v42 = vld [vmem:[%s2217_s1 + $0x2e8] ss:$16 sps:$4 sm:$0xff]  }
  0x28   :  { %846 = vmatprep.subr.bf16.mxu0 %v1520_v43  ;;  %928 = vmatprep.subr.bf16.mxu1 %v1522_v44  ;;  %v1606_v43 = vld [vmem:[%s2217_s1 + $0x304] ss:$16 sps:$4 sm:$0xff]   ;;  %v1609_v44 = vld [vmem:[%s2217_s1 + $0x30c] ss:$16 sps:$4 sm:$0xff]  }
  0x2b   :  { %847 = vmatpush1.bf16.msra.mxu0 %v1524_v47  ;;  %929 = vmatpush1.bf16.msra.mxu1 %v1525_v48  ;;  %v1612_v47 = vld [vmem:[%s2217_s1 + $0x324] ss:$16 sps:$4 sm:$0xff]   ;;  %v1615_v48 = vld [vmem:[%s2217_s1 + $0x32c] ss:$16 sps:$4 sm:$0xff]  }
  0x2c   :  { %848 = vmatprep.subr.bf16.mxu0 %v1526_v49  ;;  %930 = vmatprep.subr.bf16.mxu1 %v1528_v50 }
  0x2f   :  { %849 = vmatpush1.bf16.msra.mxu0 %v1530_v53  ;;  %931 = vmatpush1.bf16.msra.mxu1 %v1531_v54 }
  0x30   :  { %850 = vmatprep.subr.bf16.mxu0 %v1532_v56  ;;  %932 = vmatprep.subr.bf16.mxu1 %v1534_v57 }
  0x33   :  { %851 = vmatpush1.bf16.msra.mxu0 %v1536_v59  ;;  %933 = vmatpush1.bf16.msra.mxu1 %v1537_v60 }
  0x34   :  { %852 = vmatprep.subr.bf16.mxu0 %v1538_v61  ;;  %934 = vmatprep.subr.bf16.mxu1 %v1540_v62 }
  0x37   :  { %853 = vmatpush1.bf16.msra.mxu0 %v1542_v63  ;;  %935 = vmatpush1.bf16.msra.mxu1 %v1543_v0 }
  0x38   :  { %854 = vmatprep.subr.bf16.mxu0 %v1544_v1  ;;  %936 = vmatprep.subr.bf16.mxu1 %v1546_v2 }
  0x3b   :  { %855 = vmatpush1.bf16.msra.mxu0 %v1548_v3  ;;  %937 = vmatpush1.bf16.msra.mxu1 %v1549_v4 }
  0x3c   :  { %856 = vmatprep.subr.bf16.mxu0 %v1550_v5  ;;  %938 = vmatprep.subr.bf16.mxu1 %v1552_v6 }
  0x3f   :  { %857 = vmatpush1.bf16.msra.mxu0 %v1554_v7  ;;  %939 = vmatpush1.bf16.msra.mxu1 %v1555_v8 }
  0x40   :  { %867 = vmatprep.subr.bf16.mxu0 %v1558_v9  ;;  %949 = vmatprep.subr.bf16.mxu1 %v1561_v10 }
  0x42   :  { %859 = vmatmul.mubr.bf16.vlgmr.msra.gmra.mrb[0].mxu0 %v1940_v12  ;;  %941 = vmatmul.mubr.bf16.vlgmr.msra.gmra.mrb[0].mxu1 %v1940_v12 }
  0x43   :  { %868 = vmatpush1.bf16.msra.mxu0 %v1556_v11  ;;  %950 = vmatpush1.bf16.msra.mxu1 %v1559_v13 }
  0x44   :  { %869 = vmatprep.subr.bf16.mxu0 %v1564_v14  ;;  %951 = vmatprep.subr.bf16.mxu1 %v1567_v15 }
  0x45   :  { %899 = vmatprep.mubr.bf16.mxu0 %v181_v16  ;;  %981 = vmatprep.mubr.bf16.mxu1 %v181_v16 }
  0x47   :  { %870 = vmatpush1.bf16.msra.mxu0 %v1562_v17  ;;  %952 = vmatpush1.bf16.msra.mxu1 %v1565_v18 }
  0x48   :  { %871 = vmatprep.subr.bf16.mxu0 %v1570_v19  ;;  %953 = vmatprep.subr.bf16.mxu1 %v1573_v20 }
  0x4b   :  { %872 = vmatpush1.bf16.msra.mxu0 %v1568_v21  ;;  %954 = vmatpush1.bf16.msra.mxu1 %v1571_v22 }
  0x4c   :  { %873 = vmatprep.subr.bf16.mxu0 %v1576_v23  ;;  %955 = vmatprep.subr.bf16.mxu1 %v1579_v24 }
  0x4f   :  { %874 = vmatpush1.bf16.msra.mxu0 %v1574_v25  ;;  %956 = vmatpush1.bf16.msra.mxu1 %v1577_v26 }
  0x50   :  { %875 = vmatprep.subr.bf16.mxu0 %v1582_v27  ;;  %957 = vmatprep.subr.bf16.mxu1 %v1585_v28 }
  0x53   :  { %876 = vmatpush1.bf16.msra.mxu0 %v1580_v29  ;;  %958 = vmatpush1.bf16.msra.mxu1 %v1583_v30 }
  0x54   :  { %877 = vmatprep.subr.bf16.mxu0 %v1588_v31  ;;  %959 = vmatprep.subr.bf16.mxu1 %v1591_v32 }
  0x57   :  { %878 = vmatpush1.bf16.msra.mxu0 %v1586_v33  ;;  %960 = vmatpush1.bf16.msra.mxu1 %v1589_v34 }
  0x58   :  { %879 = vmatprep.subr.bf16.mxu0 %v1594_v35  ;;  %961 = vmatprep.subr.bf16.mxu1 %v1597_v36 }
  0x5b   :  { %880 = vmatpush1.bf16.msra.mxu0 %v1592_v37  ;;  %962 = vmatpush1.bf16.msra.mxu1 %v1595_v38 }
  0x5c   :  { %881 = vmatprep.subr.bf16.mxu0 %v1600_v39  ;;  %963 = vmatprep.subr.bf16.mxu1 %v1603_v40 }
  0x5f   :  { %882 = vmatpush1.bf16.msra.mxu0 %v1598_v41  ;;  %964 = vmatpush1.bf16.msra.mxu1 %v1601_v42 }
  0x60   :  { %883 = vmatprep.subr.bf16.mxu0 %v1606_v43  ;;  %965 = vmatprep.subr.bf16.mxu1 %v1609_v44 }
  0x61   :  { %12 = vsyncpa [#allocation3], 0  ;;  %v1610_v49 = vld [vmem:[%s2217_s1 + $0x320] ss:$16 sps:$4 sm:$0xff]   ;;  %v1613_v50 = vld [vmem:[%s2217_s1 + $0x328] ss:$16 sps:$4 sm:$0xff]   ;;  %v180_v11 = vcombine.high %v1940_v12, %v1940_v12 }
  0x62   :  { %v1618_v51 = vld [vmem:[%s2217_s1 + $0x344] ss:$16 sps:$4 sm:$0xff]   ;;  %v1621_v52 = vld [vmem:[%s2217_s1 + $0x34c] ss:$16 sps:$4 sm:$0xff]   ;;  %v1616_v53 = vld [vmem:[%s2217_s1 + $0x340] ss:$16 sps:$4 sm:$0xff]  }
  0x63   :  { %884 = vmatpush1.bf16.msra.mxu0 %v1604_v45  ;;  %966 = vmatpush1.bf16.msra.mxu1 %v1607_v46  ;;  %v1619_v54 = vld [vmem:[%s2217_s1 + $0x348] ss:$16 sps:$4 sm:$0xff]   ;;  %v1624_v55 = vld [vmem:[%s2217_s1 + $0x364] ss:$16 sps:$4 sm:$0xff]   ;;  %v1627_v56 = vld [vmem:[%s2217_s1 + $0x36c] ss:$16 sps:$4 sm:$0xff]  }
  0x64   :  { %885 = vmatprep.subr.bf16.mxu0 %v1612_v47  ;;  %967 = vmatprep.subr.bf16.mxu1 %v1615_v48  ;;  %v1622_v57 = vld [vmem:[%s2217_s1 + $0x360] ss:$16 sps:$4 sm:$0xff]   ;;  %v1625_v58 = vld [vmem:[%s2217_s1 + $0x368] ss:$16 sps:$4 sm:$0xff]   ;;  %v1630_v59 = vld [vmem:[%s2217_s1 + $0x384] ss:$16 sps:$4 sm:$0xff]  }
  0x65   :  { %v1633_v60 = vld [vmem:[%s2217_s1 + $0x38c] ss:$16 sps:$4 sm:$0xff]   ;;  %v1628_v61 = vld [vmem:[%s2217_s1 + $0x380] ss:$16 sps:$4 sm:$0xff]   ;;  %v1631_v62 = vld [vmem:[%s2217_s1 + $0x388] ss:$16 sps:$4 sm:$0xff]  }
  0x66   :  { %v1636_v63 = vld [vmem:[%s2217_s1 + $0x3a4] ss:$16 sps:$4 sm:$0xff]   ;;  %v1639_v0 = vld [vmem:[%s2217_s1 + $0x3ac] ss:$16 sps:$4 sm:$0xff]   ;;  %v1634_v1 = vld [vmem:[%s2217_s1 + $0x3a0] ss:$16 sps:$4 sm:$0xff]  }
  0x67   :  { %886 = vmatpush1.bf16.msra.mxu0 %v1610_v49  ;;  %968 = vmatpush1.bf16.msra.mxu1 %v1613_v50  ;;  %v1637_v2 = vld [vmem:[%s2217_s1 + $0x3a8] ss:$16 sps:$4 sm:$0xff]   ;;  %v1642_v3 = vld [vmem:[%s2217_s1 + $0x3c4] ss:$16 sps:$4 sm:$0xff]   ;;  %v1645_v4 = vld [vmem:[%s2217_s1 + $0x3cc] ss:$16 sps:$4 sm:$0xff]  }
  0x68   :  { %887 = vmatprep.subr.bf16.mxu0 %v1618_v51  ;;  %969 = vmatprep.subr.bf16.mxu1 %v1621_v52  ;;  %v1640_v5 = vld [vmem:[%s2217_s1 + $0x3c0] ss:$16 sps:$4 sm:$0xff]   ;;  %v1643_v6 = vld [vmem:[%s2217_s1 + $0x3c8] ss:$16 sps:$4 sm:$0xff]   ;;  %v1648_v7 = vld [vmem:[%s2217_s1 + $0x3e4] ss:$16 sps:$4 sm:$0xff]  }
  0x69   :  { %v1651_v8 = vld [vmem:[%s2217_s1 + $0x3ec] ss:$16 sps:$4 sm:$0xff]   ;;  %v1646_v9 = vld [vmem:[%s2217_s1 + $0x3e0] ss:$16 sps:$4 sm:$0xff]   ;;  %v1649_v10 = vld [vmem:[%s2217_s1 + $0x3e8] ss:$16 sps:$4 sm:$0xff]  }
  0x6a   :  { %v1652_v13 = vld [vmem:[%s2219_s3] sm:$0xff]   ;;  %v1693_v14 = vmov 0.0   ;;  %v1653_v15 = vld [vmem:[%s2219_s3 + $0x8] sm:$0xff]   ;;  %v1654_v12 = vld [vmem:[%s2219_s3 + $0x10] sm:$0xff]   ;;  %vm1694_vm0 = vmmov 0   ;;  %s1695_s9 = smov [#allocation2]  }
  0x6b   :  { %888 = vmatpush1.bf16.msra.mxu0 %v1616_v53  ;;  %970 = vmatpush1.bf16.msra.mxu1 %v1619_v54  ;;  %v1655_v16 = vld [vmem:[%s2219_s3 + $0x18] sm:$0xff]   ;;  %v1656_v17 = vld [vmem:[%s2219_s3 + $0x20] sm:$0xff]   ;;  %v1657_v18 = vld [vmem:[%s2219_s3 + $0x28] sm:$0xff]   ;;  %s1234_s10 = sshll.u32 %s1695_s9, 4  ;;  %s1235_s10 = int_to_ptr.vmem [resolvable:$true] %s1234_s10 }
  0x6c   :  { %889 = vmatprep.subr.bf16.mxu0 %v1624_v55  ;;  %971 = vmatprep.subr.bf16.mxu1 %v1627_v56  ;;  %v1658_v19 = vld [vmem:[%s2219_s3 + $0x30] sm:$0xff]   ;;  %v1659_v20 = vld [vmem:[%s2219_s3 + $0x38] sm:$0xff]   ;;  %v1660_v21 = vld [vmem:[%s2221_s5] sm:$0xff]   ;;  %p1673_p1 = scmp.lt.s32.totalorder %s1235_s10, %s1235_s10 }
  0x6d   :  { %v1661_v22 = vld [vmem:[%s2221_s5 + $0x8] sm:$0xff]   ;;  %v1662_v23 = vld [vmem:[%s2221_s5 + $0x10] sm:$0xff]   ;;  %v1663_v24 = vld [vmem:[%s2221_s5 + $0x18] sm:$0xff]  }
  0x6e   :  { %v1664_v25 = vld [vmem:[%s2221_s5 + $0x20] sm:$0xff]   ;;  %v1665_v26 = vld [vmem:[%s2221_s5 + $0x28] sm:$0xff]   ;;  %v1666_v42 = vld [vmem:[%s2221_s5 + $0x30] sm:$0xff]  }
  0x6f   :  { %890 = vmatpush1.bf16.msra.mxu0 %v1622_v57  ;;  %972 = vmatpush1.bf16.msra.mxu1 %v1625_v58  ;;  %v1371_v35 = vld [vmem:[%s2218_s2] ss:$0 sm:$0xff]  ;;  %v1667_v43 = vld [vmem:[%s2221_s5 + $0x38] sm:$0xff]  }
  0x70   :  { %891 = vmatprep.subr.bf16.mxu0 %v1630_v59  ;;  %973 = vmatprep.subr.bf16.mxu1 %v1633_v60  ;;  %v1372_v44 = vld [vmem:[%s2220_s4] ss:$0 sm:$0xff]  ;;  %s1668_s4 = scalar_lea.vmem %s1235_s10, 32 }
  0x71   :  { %v1381_v52 = vld [vmem:[%s2222_s6] ss:$0 sm:$0xff]  ;;  %p1669_p0 = scmp.ne.s32.totalorder %s1235_s10, %s1668_s4  ;;  %p1674_p2 = scmp.lt.s32.totalorder %s1668_s4, %s1668_s4 }
  0x73   :  { %892 = vmatpush1.bf16.msra.mxu0 %v1628_v61  ;;  %974 = vmatpush1.bf16.msra.mxu1 %v1631_v62  ;;  %p1675_p3 = por %p1674_p2, %p1673_p1 }
  0x74   :  { %893 = vmatprep.subr.bf16.mxu0 %v1636_v63  ;;  %975 = vmatprep.subr.bf16.mxu1 %v1639_v0 }
  0x75   :  { %p1676_p4 = pnand %p1675_p3, %p1669_p0 }
  0x77   :  { %894 = vmatpush1.bf16.msra.mxu0 %v1634_v1  ;;  %976 = vmatpush1.bf16.msra.mxu1 %v1637_v2 }
  0x78   :  { %895 = vmatprep.subr.bf16.mxu0 %v1642_v3  ;;  %977 = vmatprep.subr.bf16.mxu1 %v1645_v4 }
  0x7b   :  { %896 = vmatpush1.bf16.msra.mxu0 %v1640_v5  ;;  %978 = vmatpush1.bf16.msra.mxu1 %v1643_v6 }
  0x7c   :  { %897 = vmatprep.subr.bf16.mxu0 %v1648_v7  ;;  %979 = vmatprep.subr.bf16.mxu1 %v1651_v8 }
  0x7f   :  { %898 = vmatpush1.bf16.msra.mxu0 %v1646_v9  ;;  %980 = vmatpush1.bf16.msra.mxu1 %v1649_v10 }
  0x80   :  { %1408 = vmatprep.subr.bf16.mxu0 %v1693_v14  ;;  %1428 = vmatprep.subr.bf16.mxu1 %v1693_v14 }
  0x82   :  { %900 = vmatmul.mubr.bf16.vlgmr.msra.gmra.mrb[0].mxu0 %v180_v11  ;;  %982 = vmatmul.mubr.bf16.vlgmr.msra.gmra.mrb[0].mxu1 %v180_v11 }
  0x83   :  { %1409 = vmatpush3.bf16.msra.mxu0 %v1652_v13  ;;  %1424 = vmatprep.mubr.msk.bf16.mxu0 %vm1694_vm0, %v1693_v14 }
  0x84   :  { %1410 = vmatprep.subr.bf16.mxu0 %v1693_v14  ;;  %1444 = vmatprep.mubr.msk.bf16.mxu1 %vm1694_vm0, %v1693_v14 }
  0x85   :  { %1429 = vmatpush3.bf16.msra.mxu1 %v1660_v21 }
  0x86   :  { %1430 = vmatprep.subr.bf16.mxu1 %v1693_v14 }
  0x87   :  { %1411 = vmatpush3.bf16.msra.mxu0 %v1653_v15 }
  0x88   :  { %1412 = vmatprep.subr.bf16.mxu0 %v1693_v14 }
  0x89   :  { %1431 = vmatpush3.bf16.msra.mxu1 %v1661_v22 }
  0x8a   :  { %1432 = vmatprep.subr.bf16.mxu1 %v1693_v14 }
  0x8b   :  { %1413 = vmatpush3.bf16.msra.mxu0 %v1654_v12 }
  0x8c   :  { %1414 = vmatprep.subr.bf16.mxu0 %v1693_v14 }
  0x8d   :  { %1433 = vmatpush3.bf16.msra.mxu1 %v1662_v23 }
  0x8e   :  { %1434 = vmatprep.subr.bf16.mxu1 %v1693_v14 }
  0x8f   :  { %1415 = vmatpush3.bf16.msra.mxu0 %v1655_v16 }
  0x90   :  { %1416 = vmatprep.subr.bf16.mxu0 %v1693_v14 }
  0x91   :  { %1435 = vmatpush3.bf16.msra.mxu1 %v1663_v24 }
  0x92   :  { %1436 = vmatprep.subr.bf16.mxu1 %v1693_v14 }
  0x93   :  { %1417 = vmatpush3.bf16.msra.mxu0 %v1656_v17 }
  0x94   :  { %1418 = vmatprep.subr.bf16.mxu0 %v1693_v14 }
  0x95   :  { %1437 = vmatpush3.bf16.msra.mxu1 %v1664_v25 }
  0x96   :  { %1438 = vmatprep.subr.bf16.mxu1 %v1693_v14 }
  0x97   :  { %1419 = vmatpush3.bf16.msra.mxu0 %v1657_v18 }
  0x98   :  { %1420 = vmatprep.subr.bf16.mxu0 %v1693_v14 }
  0x99   :  { %1439 = vmatpush3.bf16.msra.mxu1 %v1665_v26 }
  0x9a   :  { %1440 = vmatprep.subr.bf16.mxu1 %v1693_v14 }
  0x9b   :  { %1421 = vmatpush3.bf16.msra.mxu0 %v1658_v19 }
  0x9c   :  { %1422 = vmatprep.subr.bf16.mxu0 %v1693_v14 }
  0x9d   :  { %1441 = vmatpush3.bf16.msra.mxu1 %v1666_v42 }
  0x9e   :  { %1442 = vmatprep.subr.bf16.mxu1 %v1693_v14 }
  0x9f   :  { %1423 = vmatpush3.bf16.msra.mxu0 %v1659_v20 }
  0xa1   :  { %1443 = vmatpush3.bf16.msra.mxu1 %v1667_v43 }
 0x155   :  { %v901_v27 = vpop.f32.mrb[0].mxu0  ;;  %v983_v28 = vpop.f32.mrb[0].mxu1 }
 0x156   :  { %v903_v29 = vpop.f32.mrb[1].mxu0  ;;  %v985_v30 = vpop.f32.mrb[1].mxu1 }
 0x157   :  { %v990_v31 = vmax.f32 %v901_v27, %v903_v29  ;;  %v991_v32 = vmax.f32 %v983_v28, %v985_v30  ;;  %v905_v33 = vpop.f32.mrb[2].mxu0  ;;  %v987_v34 = vpop.f32.mrb[2].mxu1 }
 0x158   :  { %v906_v36 = vpop.f32.mrb[3].mxu0  ;;  %v988_v37 = vpop.f32.mrb[3].mxu1 }
 0x159   :  { %v992_v38 = vmax.f32 %v990_v31, %v991_v32 }
 0x15b   :  { %v1000_v39 = vadd.f32 %v1371_v35, %v992_v38 }
 0x15d   :  { %v1001_v40 = vmax.f32 %v1000_v39, 0.0 }
 0x15f   :  { %v1002_v41 = vpack.c.bf16 %v1001_v40, %v1001_v40 }
 0x161   :  { %1425 = vmatmul.mubr.bf16.vlgmr.msra.gmra.mrb[4].mxu0 %v1002_v41 }
 0x234   :  { %v1108_v45 = vpop.f32.mrb[4].mxu0 }
 0x235   :  { %v1109_v46 = vadd.f32 %v1372_v44, %v1108_v45  ;;  %v1426_v47 = vpop.f32.mrb[5].mxu0 }
 0x236   :  { %v1111_v48 = vpop.f32.mrb[6].mxu0 }
 0x237   :  { %v1114_v49 = vmax.f32 %v1109_v46, 0.0  ;;  %v1427_v50 = vpop.f32.mrb[7].mxu0 }
 0x239   :  { %v1115_v51 = vpack.c.bf16 %v1114_v49, %v1114_v49 }
 0x23b   :  { %1445 = vmatmul.mubr.bf16.vlgmr.msra.gmra.mrb[4].mxu1 %v1115_v51 }
 0x30e   :  { %v1221_v53 = vpop.f32.mrb[4].mxu1 }
 0x30f   :  { %v1222_v54 = vadd.f32 %v1381_v52, %v1221_v53  ;;  %v1446_v55 = vpop.f32.mrb[5].mxu1 }
 0x310   :  { %v1224_v56 = vpop.f32.mrb[6].mxu1 }
 0x311   :  { %1227 = vst [vmem:[#allocation2] sm:$0x3] %v1222_v54  ;;  %v1447_v57 = vpop.f32.mrb[7].mxu1 }
 0x312   :  { %1679 = shalt.err (!%p1676_p4)
}
 0x313   :  { %s1680_s6 = scalar_lea.hbm %s2223_s7, 32 }
 0x314   :  { %p1681_p5 = scmp.ne.s32.totalorder %s2223_s7, %s1680_s6  ;;  %p1684_p6 = scmp.lt.u32.totalorder %s1680_s6, %s2223_s7 }
 0x316   :  { %p1686_p7 = pnand %p1684_p6, %p1681_p5 }
 0x318   :  { %1689 = shalt.err (!%p1686_p7)
}
 0x319   :  { %1237 = dma.vmem_to_hbm [thread:$0]  %s1235_s10, 32, %s2223_s7, [#allocation3]  }
 0x31a   :  { %1690 = dma.done.wait [#allocation3], 32  }
 0x31b   :  { %1691 = vsyncadd [#allocation3], 4294967264 }
 0x31c   :  { %1241 = vsyncpa [#allocation3], 1 }

</bundles_post_ra>
